<compile_context>
chip_gen: v5e
topology: v5e:2x2
jax: 0.10.0
libtpu: 0.0.40
codegen_flags: <defaults>
</compile_context>

<pallas_src>
import numpy as np
import jax
import jax.numpy as jnp
from jax import lax
from jax.experimental import pallas as pl
from jax.experimental.pallas import tpu as pltpu

INTER = 24
EPS = 1e-5


# ----------------------------------------------------------------------------
# Pallas kernel: one tile of TILE_N pixel-rows through the whole encoder.
# ----------------------------------------------------------------------------
def encoder_kernel(x_ref, w1_ref, w2_ref, w3_ref, w4_ref, vec_ref, pool_ref,
                   out_ref):
    K = w2_ref.shape[0]           # INTER * D1
    Fp = w4_ref.shape[1]          # feature_dim padded to a multiple of 128

    x = x_ref[...]                                                    # (T, C) bf16

    t1 = vec_ref[0:1, :K]
    t2 = vec_ref[1:2, :K]
    s3 = vec_ref[2:3, :K]
    t3 = vec_ref[3:4, :K]
    t4 = vec_ref[4:5, :Fp]

    # conv1 (bn1 scale folded into W1) + shift + relu
    z1 = jnp.dot(x, w1_ref[...], preferred_element_type=jnp.float32)
    a1 = jnp.maximum(z1 + t1, 0.0)                                    # (T, K) f32

    # conv2 (bn2 scale folded) + shift + relu
    z2 = jnp.dot(a1.astype(jnp.bfloat16), w2_ref[...],
                 preferred_element_type=jnp.float32)
    a2 = jnp.maximum(z2 + t2, 0.0)

    # conv3, residual add (pre-BN, as in PyTorch), bn3 scale/shift, relu
    z3 = jnp.dot(a2.astype(jnp.bfloat16), w3_ref[...],
                 preferred_element_type=jnp.float32)
    a3 = jnp.maximum((a1 + z3) * s3 + t3, 0.0)

    # conv4 (bn4 scale folded, lane-padded) + shift + relu
    z4 = jnp.dot(a3.astype(jnp.bfloat16), w4_ref[...],
                 preferred_element_type=jnp.float32)
    a4 = jnp.maximum(z4 + t4, 0.0)                                    # (T, Fp)

    # AvgPool3d((1, patch, patch)) as an MXU matmul: (B_pad, T) @ (T, Fp)
    partial = jnp.dot(pool_ref[...], a4, preferred_element_type=jnp.float32)
    out_ref[...] = partial[None, :, :]


# ----------------------------------------------------------------------------
# Parameter glue: Conv3d (k,1,1) weights -> dense depth-conv matrices; fold
# conv bias + eval-mode BatchNorm into per-output scale/shift.
# ----------------------------------------------------------------------------
def conv1_matrix(w1, C, D1):
    # w1: (24, 1, 7, 1, 1), stride 2, pad 1 along spectral axis.
    w = np.asarray(w1)[:, 0, :, 0, 0]                                 # (24, 7)
    M = np.zeros((C, INTER * D1), np.float32)
    for co in range(INTER):
        for d in range(D1):
            for k in range(7):
                s = 2 * d + k - 1
                if 0 <= s < C:
                    M[s, co * D1 + d] += w[co, k]
    return M


def conv_depth_matrix(w, D1):
    # w: (Cout, Cin, 7, 1, 1), stride 1, pad 3.
    w = np.asarray(w)[:, :, :, 0, 0]                                  # (Cout, Cin, 7)
    Cout, Cin, Kk = w.shape
    M = np.zeros((Cin * D1, Cout * D1), np.float32)
    for co in range(Cout):
        for ci in range(Cin):
            for do in range(D1):
                for k in range(Kk):
                    di = do + k - 3
                    if 0 <= di < D1:
                        M[ci * D1 + di, co * D1 + do] += w[co, ci, k]
    return M


def fold_bn(conv_bias, gamma, beta, mean, var, depth_repeat):
    s = np.asarray(gamma) / np.sqrt(np.asarray(var) + EPS)
    t = (np.asarray(conv_bias) - np.asarray(mean)) * s + np.asarray(beta)
    return (np.repeat(s, depth_repeat).astype(np.float32),
            np.repeat(t, depth_repeat).astype(np.float32))


# ----------------------------------------------------------------------------
# Wrapper
# ----------------------------------------------------------------------------
def spectral_encoder_pallas(x, P, patch_size, feature_dim, tile_n=512):
    B, C, H, W = x.shape
    D1 = (C + 2 - 7) // 2 + 1
    K = INTER * D1
    HW = H * W
    N = B * HW

    F_pad = ((feature_dim + 127) // 128) * 128
    B_pad = ((max(B, 8) + 7) // 8) * 8
    tile_n = max(128, (tile_n // 128) * 128)          # lane-aligned row tiles
    num_tiles = pl.cdiv(N, tile_n)
    N_pad = num_tiles * tile_n
    V_w = max(K, F_pad)

    # pixels -> rows in (b, h, w) order; pad to whole tiles; bf16 for the MXU.
    x2d = jnp.transpose(x, (0, 2, 3, 1)).reshape(N, C).astype(jnp.float32)
    if N_pad > N:
        x2d = jnp.pad(x2d, ((0, N_pad - N), (0, 0)))
    x2d = x2d.astype(jnp.bfloat16)

    # eval-mode BN folding
    s1, t1 = fold_bn(P["b1"], P["g1"], P["be1"], P["m1"], P["v1"], D1)
    s2, t2 = fold_bn(P["b2"], P["g2"], P["be2"], P["m2"], P["v2"], D1)
    s3, t3 = fold_bn(P["b3"], P["g3"], P["be3"], P["m3"], P["v3"], D1)
    s4, t4 = fold_bn(P["b4"], P["g4"], P["be4"], P["m4"], P["v4"], 1)

    W1 = conv1_matrix(P["w1"], C, D1) * s1[None, :]
    W2 = conv_depth_matrix(P["w2"], D1) * s2[None, :]
    W3 = conv_depth_matrix(P["w3"], D1)   # bn3 scale applied in-kernel (residual pre-BN)
    W4 = np.asarray(P["w4"]).reshape(feature_dim, K).T * s4[None, :]  # (K, F)
    W4p = np.zeros((K, F_pad), np.float32)
    W4p[:, :feature_dim] = W4

    # all shift/scale vectors packed into one small array
    vec = np.zeros((8, V_w), np.float32)
    vec[0, :K] = t1
    vec[1, :K] = t2
    vec[2, :K] = s3
    vec[3, :K] = t3
    vec[4, :feature_dim] = t4

    # pooling matrix: rows = padded batch, cols = padded pixel rows
    poolT = np.zeros((B_pad, N_pad), np.float32)
    for b in range(B):
        poolT[b, b * HW:(b + 1) * HW] = 1.0 / HW

    args = (
        x2d,
        jnp.asarray(W1, jnp.bfloat16),
        jnp.asarray(W2, jnp.bfloat16),
        jnp.asarray(W3, jnp.bfloat16),
        jnp.asarray(W4p, jnp.bfloat16),
        jnp.asarray(vec),
        jnp.asarray(poolT),
    )

    in_specs = [
        pl.BlockSpec((tile_n, C), lambda t: (t, 0)),       # x slab: pipelined
        pl.BlockSpec((C, K), lambda t: (0, 0)),            # weights: VMEM-resident
        pl.BlockSpec((K, K), lambda t: (0, 0)),
        pl.BlockSpec((K, K), lambda t: (0, 0)),
        pl.BlockSpec((K, F_pad), lambda t: (0, 0)),
        pl.BlockSpec((8, V_w), lambda t: (0, 0)),          # packed shifts/scale
        pl.BlockSpec((B_pad, tile_n), lambda t: (0, t)),   # pooling matrix tile
    ]

    partials = pl.pallas_call(
        encoder_kernel,
        out_shape=jax.ShapeDtypeStruct((num_tiles, B_pad, F_pad), jnp.float32),
        grid=(num_tiles,),
        in_specs=in_specs,
        out_specs=pl.BlockSpec((1, B_pad, F_pad), lambda t: (t, 0, 0)),
        compiler_params=pltpu.CompilerParams(
            dimension_semantics=("parallel",),              # megacore on v7x
            vmem_limit_bytes=32 * 1024 * 1024,              # safe on v5e/v6e/v7x
        ),
    )(*args)

    # tiny (num_tiles, B_pad, F_pad) reduction + slice outside the kernel
    return jnp.sum(partials, axis=0)[:B, :feature_dim]


# ----------------------------------------------------------------------------
# Pure-JAX reference (mirrors the PyTorch forward with Conv3d semantics).
# ----------------------------------------------------------------------------
def reference_forward(x, P):
    dn = ("NCDHW", "OIDHW", "NCDHW")

    def bn(y, g, b, m, v):
        sh = (1, -1, 1, 1, 1)
        return (y - m.reshape(sh)) / jnp.sqrt(v.reshape(sh) + EPS) * g.reshape(sh) + b.reshape(sh)

    x5 = x[:, None]                                                   # (B,1,C,H,W)
    y = lax.conv_general_dilated(x5, P["w1"], (2, 1, 1),
                                 [(1, 1), (0, 0), (0, 0)], dimension_numbers=dn)
    y = y + P["b1"].reshape(1, -1, 1, 1, 1)
    y = jax.nn.relu(bn(y, P["g1"], P["be1"], P["m1"], P["v1"]))
    res = y
    z = lax.conv_general_dilated(y, P["w2"], (1, 1, 1),
                                 [(3, 3), (0, 0), (0, 0)], dimension_numbers=dn)
    z = z + P["b2"].reshape(1, -1, 1, 1, 1)
    z = jax.nn.relu(bn(z, P["g2"], P["be2"], P["m2"], P["v2"]))
    z = lax.conv_general_dilated(z, P["w3"], (1, 1, 1),
                                 [(3, 3), (0, 0), (0, 0)], dimension_numbers=dn)
    z = z + P["b3"].reshape(1, -1, 1, 1, 1)
    z = res + z
    z = jax.nn.relu(bn(z, P["g3"], P["be3"], P["m3"], P["v3"]))
    z = lax.conv_general_dilated(z, P["w4"], (1, 1, 1),
                                 [(0, 0), (0, 0), (0, 0)], dimension_numbers=dn)
    z = z + P["b4"].reshape(1, -1, 1, 1, 1)
    z = jax.nn.relu(bn(z, P["g4"], P["be4"], P["m4"], P["v4"]))
    z = z.reshape(z.shape[0], z.shape[1], z.shape[3], z.shape[4])     # drop depth=1
    z = jnp.mean(z, axis=(2, 3))
    return z


# ----------------------------------------------------------------------------
# Main
# ----------------------------------------------------------------------------
if __name__ == "__main__":
    B, input_channels, patch_size, feature_dim = 2, 16, 16, 32
    D1 = (input_channels + 2 - 7) // 2 + 1                            # = 6

    key = jax.random.PRNGKey(0)
    ks = jax.random.split(key, 24)

    def nrm(k, shape, scale=0.1):
        return (scale * jax.random.normal(k, shape)).astype(jnp.float32)

    P = {
        "w1": nrm(ks[0], (INTER, 1, 7, 1, 1)), "b1": nrm(ks[1], (INTER,)),
        "w2": nrm(ks[2], (INTER, INTER, 7, 1, 1)), "b2": nrm(ks[3], (INTER,)),
        "w3": nrm(ks[4], (INTER, INTER, 7, 1, 1)), "b3": nrm(ks[5], (INTER,)),
        "w4": nrm(ks[6], (feature_dim, INTER, D1, 1, 1)), "b4": nrm(ks[7], (feature_dim,)),
    }
    # eval-mode BatchNorm parameters (deterministic, non-trivial)
    for i, (name, c) in enumerate([("1", INTER), ("2", INTER), ("3", INTER), ("4", feature_dim)]):
        kg, kb, km, kv = jax.random.split(ks[8 + i], 4)
        P["g" + name] = (1.0 + 0.1 * jax.random.normal(kg, (c,))).astype(jnp.float32)
        P["be" + name] = nrm(kb, (c,))
        P["m" + name] = nrm(km, (c,), 0.05)
        P["v" + name] = (1.0 + 0.1 * jnp.abs(jax.random.normal(kv, (c,)))).astype(jnp.float32)

    x = nrm(ks[20], (B, input_channels, patch_size, patch_size), 1.0)

    # tile_n=128 -> 4-step grid at this toy size (exercises the pipelined grid)
    out = spectral_encoder_pallas(x, P, patch_size, feature_dim, tile_n=128)
    out = jax.block_until_ready(out)

    ref = jax.block_until_ready(reference_forward(x, P))

    assert out.shape == (B, feature_dim), out.shape
    # bf16 MXU operands (f32 accumulation) -> looser tolerance than pure f32.
    np.testing.assert_allclose(np.asarray(out), np.asarray(ref), rtol=2e-2, atol=2e-2)
    print("KERNEL_OK")
</pallas_src>

<mosaic_0001>
module attributes {stable_mosaic.version = 11 : i64} {
  func.func @encoder_kernel(%arg0: i32, %arg1: memref<128x16xbf16, #tpu.memory_space<vmem>>, %arg2: memref<16x144xbf16, #tpu.memory_space<vmem>>, %arg3: memref<144x144xbf16, #tpu.memory_space<vmem>>, %arg4: memref<144x144xbf16, #tpu.memory_space<vmem>>, %arg5: memref<144x128xbf16, #tpu.memory_space<vmem>>, %arg6: memref<8x144xf32, #tpu.memory_space<vmem>>, %arg7: memref<8x128xf32, #tpu.memory_space<vmem>>, %arg8: memref<1x8x128xf32, #tpu.memory_space<vmem>>) attributes {dimension_semantics = [#tpu.dimension_semantics<parallel>], iteration_bounds = array<i64: 4>, scalar_prefetch = 0 : i64, scratch_operands = 0 : i64, tpu.core_type = #tpu.core_type<tc>, window_params = [{transform_indices = @transform_0, window_bounds = array<i64: 128, 16>}, {pipeline_mode = #tpu.pipeline_mode<synchronous>, transform_indices = @transform_1, window_bounds = array<i64: 16, 144>}, {pipeline_mode = #tpu.pipeline_mode<synchronous>, transform_indices = @transform_2, window_bounds = array<i64: 144, 144>}, {pipeline_mode = #tpu.pipeline_mode<synchronous>, transform_indices = @transform_3, window_bounds = array<i64: 144, 144>}, {pipeline_mode = #tpu.pipeline_mode<synchronous>, transform_indices = @transform_4, window_bounds = array<i64: 144, 128>}, {pipeline_mode = #tpu.pipeline_mode<synchronous>, transform_indices = @transform_5, window_bounds = array<i64: 8, 144>}, {transform_indices = @transform_6, window_bounds = array<i64: 8, 128>}, {transform_indices = @transform_7, window_bounds = array<i64: 1, 8, 128>}]} {
    %c0 = arith.constant 0 : index
    %c0_0 = arith.constant 0 : index
    %0 = vector.load %arg1[%c0, %c0_0] : memref<128x16xbf16, #tpu.memory_space<vmem>>, vector<128x16xbf16>
    %c0_1 = arith.constant 0 : index
    %c0_2 = arith.constant 0 : index
    %1 = vector.load %arg6[%c0_1, %c0_2] : memref<8x144xf32, #tpu.memory_space<vmem>>, vector<1x144xf32>
    %c1 = arith.constant 1 : index
    %c0_3 = arith.constant 0 : index
    %2 = vector.load %arg6[%c1, %c0_3] : memref<8x144xf32, #tpu.memory_space<vmem>>, vector<1x144xf32>
    %c2 = arith.constant 2 : index
    %c0_4 = arith.constant 0 : index
    %3 = vector.load %arg6[%c2, %c0_4] : memref<8x144xf32, #tpu.memory_space<vmem>>, vector<1x144xf32>
    %c3 = arith.constant 3 : index
    %c0_5 = arith.constant 0 : index
    %4 = vector.load %arg6[%c3, %c0_5] : memref<8x144xf32, #tpu.memory_space<vmem>>, vector<1x144xf32>
    %c4 = arith.constant 4 : index
    %c0_6 = arith.constant 0 : index
    %5 = vector.load %arg6[%c4, %c0_6] : memref<8x144xf32, #tpu.memory_space<vmem>>, vector<1x128xf32>
    %c0_7 = arith.constant 0 : index
    %c0_8 = arith.constant 0 : index
    %6 = vector.load %arg2[%c0_7, %c0_8] : memref<16x144xbf16, #tpu.memory_space<vmem>>, vector<16x144xbf16>
    %cst = arith.constant dense<0.000000e+00> : vector<128x144xf32>
    %7 = tpu.matmul %0, %6, %cst {dimension_numbers = #tpu.dot_dimension_numbers<[1], [0], [0], [1], [0, 0, 1, 1], [], []>} : vector<128x16xbf16>, vector<16x144xbf16>, vector<128x144xf32> -> vector<128x144xf32>
    %8 = vector.broadcast %1 : vector<1x144xf32> to vector<128x144xf32>
    %9 = arith.addf %7, %8 : vector<128x144xf32>
    %cst_9 = arith.constant 0.000000e+00 : f32
    %10 = vector.broadcast %cst_9 : f32 to vector<128x144xf32>
    %11 = arith.maximumf %9, %10 : vector<128x144xf32>
    %12 = arith.truncf %11 : vector<128x144xf32> to vector<128x144xbf16>
    %c0_10 = arith.constant 0 : index
    %c0_11 = arith.constant 0 : index
    %13 = vector.load %arg3[%c0_10, %c0_11] : memref<144x144xbf16, #tpu.memory_space<vmem>>, vector<144x144xbf16>
    %cst_12 = arith.constant dense<0.000000e+00> : vector<128x144xf32>
    %14 = tpu.matmul %12, %13, %cst_12 {dimension_numbers = #tpu.dot_dimension_numbers<[1], [0], [0], [1], [0, 0, 1, 1], [], []>} : vector<128x144xbf16>, vector<144x144xbf16>, vector<128x144xf32> -> vector<128x144xf32>
    %15 = vector.broadcast %2 : vector<1x144xf32> to vector<128x144xf32>
    %16 = arith.addf %14, %15 : vector<128x144xf32>
    %cst_13 = arith.constant 0.000000e+00 : f32
    %17 = vector.broadcast %cst_13 : f32 to vector<128x144xf32>
    %18 = arith.maximumf %16, %17 : vector<128x144xf32>
    %19 = arith.truncf %18 : vector<128x144xf32> to vector<128x144xbf16>
    %c0_14 = arith.constant 0 : index
    %c0_15 = arith.constant 0 : index
    %20 = vector.load %arg4[%c0_14, %c0_15] : memref<144x144xbf16, #tpu.memory_space<vmem>>, vector<144x144xbf16>
    %cst_16 = arith.constant dense<0.000000e+00> : vector<128x144xf32>
    %21 = tpu.matmul %19, %20, %cst_16 {dimension_numbers = #tpu.dot_dimension_numbers<[1], [0], [0], [1], [0, 0, 1, 1], [], []>} : vector<128x144xbf16>, vector<144x144xbf16>, vector<128x144xf32> -> vector<128x144xf32>
    %22 = arith.addf %11, %21 : vector<128x144xf32>
    %23 = vector.broadcast %3 : vector<1x144xf32> to vector<128x144xf32>
    %24 = arith.mulf %22, %23 : vector<128x144xf32>
    %25 = vector.broadcast %4 : vector<1x144xf32> to vector<128x144xf32>
    %26 = arith.addf %24, %25 : vector<128x144xf32>
    %cst_17 = arith.constant 0.000000e+00 : f32
    %27 = vector.broadcast %cst_17 : f32 to vector<128x144xf32>
    %28 = arith.maximumf %26, %27 : vector<128x144xf32>
    %29 = arith.truncf %28 : vector<128x144xf32> to vector<128x144xbf16>
    %c0_18 = arith.constant 0 : index
    %c0_19 = arith.constant 0 : index
    %30 = vector.load %arg5[%c0_18, %c0_19] : memref<144x128xbf16, #tpu.memory_space<vmem>>, vector<144x128xbf16>
    %cst_20 = arith.constant dense<0.000000e+00> : vector<128x128xf32>
    %31 = tpu.matmul %29, %30, %cst_20 {dimension_numbers = #tpu.dot_dimension_numbers<[1], [0], [0], [1], [0, 0, 1, 1], [], []>} : vector<128x144xbf16>, vector<144x128xbf16>, vector<128x128xf32> -> vector<128x128xf32>
    %32 = vector.broadcast %5 : vector<1x128xf32> to vector<128x128xf32>
    %33 = arith.addf %31, %32 : vector<128x128xf32>
    %cst_21 = arith.constant 0.000000e+00 : f32
    %34 = vector.broadcast %cst_21 : f32 to vector<128x128xf32>
    %35 = arith.maximumf %33, %34 : vector<128x128xf32>
    %c0_22 = arith.constant 0 : index
    %c0_23 = arith.constant 0 : index
    %36 = vector.load %arg7[%c0_22, %c0_23] : memref<8x128xf32, #tpu.memory_space<vmem>>, vector<8x128xf32>
    %cst_24 = arith.constant dense<0.000000e+00> : vector<8x128xf32>
    %37 = tpu.matmul %36, %35, %cst_24 {dimension_numbers = #tpu.dot_dimension_numbers<[1], [0], [0], [1], [0, 0, 1, 1], [], []>} : vector<8x128xf32>, vector<128x128xf32>, vector<8x128xf32> -> vector<8x128xf32>
    %38 = vector.shape_cast %37 : vector<8x128xf32> to vector<1x8x128xf32>
    %c0_25 = arith.constant 0 : index
    %c0_26 = arith.constant 0 : index
    %c0_27 = arith.constant 0 : index
    %39 = vector.load %arg8[%c0_25, %c0_26, %c0_27] : memref<1x8x128xf32, #tpu.memory_space<vmem>>, vector<1x8x128xf32>
    tpu.vector_store %arg8[%c0_25, %c0_26, %c0_27], %38 {strides = array<i32>} : memref<1x8x128xf32, #tpu.memory_space<vmem>>, vector<1x8x128xf32>,
    return
  }
  func.func @transform_0(%arg0: i32) -> (i32, i32) {
    %c0_i32 = arith.constant 0 : i32
    %c0_i32_0 = arith.constant 0 : i32
    return %arg0, %c0_i32 : i32, i32
  }
  func.func @transform_1(%arg0: i32) -> (i32, i32) {
    %c0_i32 = arith.constant 0 : i32
    %c0_i32_0 = arith.constant 0 : i32
    %c0_i32_1 = arith.constant 0 : i32
    return %c0_i32, %c0_i32_0 : i32, i32
  }
  func.func @transform_2(%arg0: i32) -> (i32, i32) {
    %c0_i32 = arith.constant 0 : i32
    %c0_i32_0 = arith.constant 0 : i32
    %c0_i32_1 = arith.constant 0 : i32
    return %c0_i32, %c0_i32_0 : i32, i32
  }
  func.func @transform_3(%arg0: i32) -> (i32, i32) {
    %c0_i32 = arith.constant 0 : i32
    %c0_i32_0 = arith.constant 0 : i32
    %c0_i32_1 = arith.constant 0 : i32
    return %c0_i32, %c0_i32_0 : i32, i32
  }
  func.func @transform_4(%arg0: i32) -> (i32, i32) {
    %c0_i32 = arith.constant 0 : i32
    %c0_i32_0 = arith.constant 0 : i32
    %c0_i32_1 = arith.constant 0 : i32
    return %c0_i32, %c0_i32_0 : i32, i32
  }
  func.func @transform_5(%arg0: i32) -> (i32, i32) {
    %c0_i32 = arith.constant 0 : i32
    %c0_i32_0 = arith.constant 0 : i32
    %c0_i32_1 = arith.constant 0 : i32
    return %c0_i32, %c0_i32_0 : i32, i32
  }
  func.func @transform_6(%arg0: i32) -> (i32, i32) {
    %c0_i32 = arith.constant 0 : i32
    %c0_i32_0 = arith.constant 0 : i32
    return %c0_i32, %arg0 : i32, i32
  }
  func.func @transform_7(%arg0: i32) -> (i32, i32, i32) {
    %c0_i32 = arith.constant 0 : i32
    %c0_i32_0 = arith.constant 0 : i32
    %c0_i32_1 = arith.constant 0 : i32
    return %arg0, %c0_i32, %c0_i32_0 : i32, i32, i32
  }
}

</mosaic_0001>

<bundles_post_ra>
// kernel: tpu_custom_call.1
= control target key start
LH: loop header
LB: loop body
LE: loop exit
PB: predicated region body
PF: predicated region fallthrough
CT: control target
= control target key end

     0   :  { %s3374_s0 = inlined_call_operand.vmem [shape: bf16[512,16], index: 0, kind: input, shape index: {}]   ;;  %s3375_s1 = inlined_call_operand.hbm [shape: bf16[16,144], index: 1, kind: input, shape index: {}]   ;;  %s3376_s2 = inlined_call_operand.vmem [shape: bf16[144,144], index: 2, kind: input, shape index: {}]   ;;  %s3377_s3 = inlined_call_operand.vmem [shape: bf16[144,144], index: 3, kind: input, shape index: {}]   ;;  %s3378_s4 = inlined_call_operand.hbm [shape: bf16[144,128], index: 4, kind: input, shape index: {}]   ;;  %s3379_s5 = inlined_call_operand.hbm [shape: f32[8,144], index: 5, kind: input, shape index: {}]   ;;  %s3380_s6 = inlined_call_operand.hbm [shape: f32[8,512], index: 6, kind: input, shape index: {}]   ;;  %s3381_s7 = inlined_call_operand.hbm [shape: f32[4,8,128], index: 7, kind: output, shape index: {}]  }
   0x1   :  { %3405 = sst [smem:[#allocation15_spill]] %s3375_s1 }
   0x2   :  { %12 = vsyncpa [#allocation3], 0 }
   0x3   :  { %13 = vsyncpa [#allocation6], 0 }
   0x4   :  { %14 = vsyncpa [#allocation9], 0 }
   0x5   :  { %16 = vsyncpa [#allocation9 + $0x1], 0 }
   0x6   :  { %17 = vsyncpa [#allocation4], 0 }
   0x7   :  { %19 = vsyncpa [#allocation4 + $0x1], 0  ;;  %s2526_s24 = smov 0   ;;  %s2528_s25 = smov 0  }
   0x8   :  { %s2530_s26 = smov 0   ;;  %s2532_s27 = smov 0  }
   0x9 LB: > { %s244_s30 = sshll.u32 %s3378_s4, 4  ;;  %s2550_s8 = sadd.s32 4294967295, %s2477_s27   ;;  %s2477_s27 = sphi %s2532_s27, %s3439_s27   ;;  %s2473_s26 = sphi %s2530_s26, %s3438_s26   ;;  %s2469_s25 = sphi %s2528_s25, %s3437_s25   ;;  %s2465_s24 = sphi %s2526_s24, %s3436_s24   ;;  %s245_s30 = int_to_ptr.hbm [resolvable:$true] %s244_s30 }
   0xa   : > { %p1844_p0 = scmp.ge.s32.totalorder %s2477_s27, 1  ;;  %p177_p1 = scmp.eq.s32.totalorder %s2550_s8, 0 }
   0xb   : > { %p213_p2 = scmp.lt.s32.totalorder %s2477_s27, 5  ;;  %s2479_s10 = smov [#allocation5]  }
   0xc   : > { %s246_s11 = sshll.u32 %s2479_s10, 4  ;;  %s3407_s1 = sld [smem:[#allocation15_spill]]  ;;  %s247_s11 = int_to_ptr.vmem [resolvable:$true] %s246_s11 }
   0xd   : > { %p2555_p3 = pnand %p1844_p0, %p213_p2  ;;  %s2480_s16 = smov [#allocation2]  }
   0xe   : > { %s226_s17 = sshll.u32 %s2480_s16, 4  ;;  %s2481_s18 = smov 64   ;;  %s227_s17 = int_to_ptr.vmem [resolvable:$true] %s226_s17 }
   0xf   : > { %p2218_p4 = pneg %p2555_p3  ;;  %s2482_s19 = smov 4  }
  0x10   : > { %s2483_s20 = smov 128   ;;  %s2484_s21 = smov 8  }
  0x11   : > { %p2566_p5 = pnand %p2218_p4, %p177_p1  ;;  %s259_s28 = sshll.u32 %s3379_s5, 4  ;;  %s260_s28 = int_to_ptr.hbm [resolvable:$true] %s259_s28 }
  0x12   : > { %s224_s14 = sshll.u32 %s3407_s1, 4  ;;  %s2485_s29 = smov [#allocation7]   ;;  %s225_s14 = int_to_ptr.hbm [resolvable:$true] %s224_s14 }
  0x13   : > { %2224 = dma.hbm_to_vmem [thread:$0]  (!%p2566_p5), %s245_s30, 1152, %s247_s11, [#allocation6], %s2481_s18, %s2481_s18, %s2482_s19  }
  0x14   : > { %2221 = dma.hbm_to_vmem [thread:$0]  (!%p2566_p5), %s225_s14, 256, %s227_s17, [#allocation3], %s2483_s20, %s2483_s20, %s2484_s21  }
  0x15   : > { %s261_s10 = sshll.u32 %s2485_s29, 4  ;;  %s1843_s30 = sadd.s32 4294967294, %s2477_s27   ;;  %s262_s10 = int_to_ptr.vmem [resolvable:$true] %s261_s10 }
  0x16   : > { %2227 = dma.hbm_to_vmem [thread:$0]  (!%p2566_p5), %s260_s28, 256, %s262_s10, [#allocation6]  }
  0x17   : > { %s2581_s11 = sadd.s32 1, %s2477_s27   ;;  %s163_s12 = sadd.s32 1, %s2473_s26 }
  0x18   : > { %s160_s13 = ssub.s32 %s2477_s27, %s2581_s11  ;;  %p170_p6 = scmp.ne.s32.totalorder %s2473_s26, %s2469_s25 }
  0x19   : > { %p161_p7 = scmp.eq.s32.totalorder %s160_s13, 0  ;;  %p171_p8 = scmp.eq.s32.totalorder %s2477_s27, 0 }
  0x1a   : > { %p176_p9 = scmp.ne.s32.totalorder %s2469_s25, %s2465_s24  ;;  %p200_p10 = scmp.eq.s32.totalorder %s2550_s8, 3 }
  0x1b   : > { %s2593_s14 = scalar_select %p161_p7, %s2473_s26, %s163_s12  }
  0x1c   : > { %p2597_p11 = por %p177_p1, %p176_p9  ;;  %p2601_p12 = por %p200_p10, %p170_p6 }
  0x1d   : > { %p206_p13 = scmp.eq.s32.totalorder %s1843_s30, 3  ;;  %p172_p0 = por %p171_p8, %p170_p6 }
  0x1e   : > { %s281_s17 = sand.u32 1, %s2473_s26   ;;  %p2239_p4 = scmp.lt.s32.totalorder %s2477_s27, 4 }
  0x1f   : > { %p2606_p2 = por %p206_p13, %p176_p9  ;;  %s1849_s19 = sshll.u32 %s281_s17, 3 }
  0x20   : > { %s1850_s20 = sshll.u32 %s2477_s27, 3  ;;  %s285_s29 = scalar_lea.vmem [#allocation8], %s1849_s19 }
  0x21   : > { %s289_s23 = scalar_lea.hbm %s3380_s6, %s1850_s20  ;;  %s293_s10 = sshll.u32 %s285_s29, 4  ;;  %s294_s10 = int_to_ptr.vmem [resolvable:$true] %s293_s10 }
  0x22   : > { %s291_s28 = sshll.u32 %s289_s23, 4  ;;  %p2615_p5 = pnand %p2239_p4, %p172_p0  ;;  %s292_s28 = int_to_ptr.hbm [resolvable:$true] %s291_s28 }
  0x23   : > { %s282_s12 = scalar_lea.sflag [#allocation9], %s281_s17  ;;  %s2373_s13 = sshra.s32 %s292_s28, 4  ;;  %s2374_s13 = int_to_ptr.hbm [resolvable:$true] %s2373_s13 }
  0x24   : > { %s2375_s1 = scalar_lea.hbm %s2374_s13, 8  ;;  %p2377_p7 = pneg %p2615_p5 }
  0x25   : > { %p2376_p6 = scmp.ne.s32.totalorder %s2374_s13, %s2375_s1  ;;  %s2380_s19 = scalar_lea.hbm %s3380_s6, 32 }
  0x26   : > { %p2381_p10 = scmp.lt.s32.totalorder %s2374_s13, %s3380_s6  ;;  %p2382_p13 = scmp.lt.s32.totalorder %s2380_s19, %s2375_s1 }
  0x27   : > { %p2378_p8 = pnand %p2377_p7, %p2376_p6 }
  0x28   : > { %p2383_p0 = por %p2382_p13, %p2381_p10 }
  0x29   : > { %p2379_p9 = pneg %p2378_p8 }
  0x2b   : > { %p2384_p4 = pnand %p2383_p0, %p2379_p9 }
  0x2d   : > { %2387 = shalt.err (!%p2384_p4)
}
  0x2e   : > { %2231 = dma.hbm_to_vmem [thread:$0]  (!%p2615_p5), %s292_s28, 128, %s294_s10, %s282_s12  }
  0x2f   : > { %302 = sbr.rel (%p2555_p3) target bundleno = 933 (0x3a5), region = 48 }
  0x34   : > { %2448 = dma.done.wait (%p177_p1), [#allocation3], 256  }
  0x35   : > { %2450 = vsyncadd (%p177_p1), [#allocation3], 4294967040 }
  0x36   : > { %2452 = dma.done.wait (%p177_p1), [#allocation6], 1408  }
  0x37   : > { %2454 = vsyncadd (%p177_p1), [#allocation6], 4294965888  ;;  %s2640_s1 = sand.u32 1, %s2469_s25  }
  0x38   : > { %s1855_s9 = sshll.u32 %s2640_s1, 3  ;;  %s320_s17 = scalar_lea.sflag [#allocation9], %s2640_s1 }
  0x39   : > { %s2646_s28 = scalar_lea.vmem [#allocation8], %s1855_s9 }
  0x3a   : > { %2456 = dma.done.wait (%p2597_p11), %s320_s17, 128  }
  0x3b   : > { %2458 = vsyncadd (%p2597_p11), %s320_s17, 4294967168  ;;  %s1857_s29 = sshll.u32 %s2550_s8, 4  ;;  %v1893_v0 = vld [vmem:[#allocation2] sm:$0xf]  ;;  %v2148_v1 = vld [vmem:[#allocation2 + $0x4] sm:$0xf0] }
  0x3c   : > { %p361_p1 = scmp.lt.s32.totalorder %s1857_s29, 63  ;;  %v2147_v2 = vld [vmem:[#allocation2 + $0x4] sm:$0xf]  ;;  %v1894_v3 = vor.u32 %v2148_v1, %v1893_v0  ;;  %v1895_v4 = vld [vmem:[#allocation2 + $0x8] sm:$0xf0]  ;;  %vm448_vm0 = vcmask 130048  }
  0x3d   : > { %v1898_v5 = vor.u32 %v2147_v2, %v1895_v4  ;;  %v1973_v11 = vld [vmem:[%s3376_s2 + $0x70] sm:$0xf]  ;;  %v2164_v12 = vld [vmem:[%s3376_s2 + $0x74] sm:$0xf0]  ;;  %v2163_v13 = vld [vmem:[%s3376_s2 + $0x74] sm:$0xf] }
  0x3e   : > { %s3441_s29 = smov (!%p361_p1, %s1857_s29), 63  ;;  %480 = vmatpush.bf16.msra.mxu0 %v1894_v3  ;;  %v1974_v14 = vor.u32 %v2164_v12, %v1973_v11  ;;  %v1975_v15 = vld [vmem:[%s3376_s2 + $0x78] sm:$0xf0]  ;;  %v1965_v18 = vld [vmem:[%s3376_s2 + $0x60] sm:$0xf]  ;;  %s359_s30 = scalar_lea.vmem [#allocation10], %s1855_s9 }
  0x3f   : > { %s1858_s10 = sshll.u32 %s3441_s29, 2  ;;  %529 = vmatpush.bf16.msra.mxu1 %v1898_v5  ;;  %v1978_v16 = vor.u32 %v2163_v13, %v1975_v15  ;;  %v2162_v19 = vld [vmem:[%s3376_s2 + $0x64] sm:$0xf0]  ;;  %v2161_v20 = vld [vmem:[%s3376_s2 + $0x64] sm:$0xf]  ;;  %s1727_s12 = sshll.u32 %s359_s30, 4  ;;  %s1728_s12 = int_to_ptr.vmem [resolvable:$true] %s1727_s12 }
  0x40   : > { %s2656_s13 = scalar_lea.vmem %s3374_s0, %s1858_s10  ;;  %2194 = vmatpush.bf16.msra.mxu2 %v1974_v14  ;;  %v1966_v21 = vor.u32 %v2162_v19, %v1965_v18  ;;  %v1967_v22 = vld [vmem:[%s3376_s2 + $0x68] sm:$0xf0]  ;;  %v1957_v24 = vld [vmem:[%s3376_s2 + $0x50] sm:$0xf]  ;;  %v2160_v25 = vld [vmem:[%s3376_s2 + $0x54] sm:$0xf0] }
  0x41   : > { %v2139_v6 = vld [vmem:[%s2656_s13] sm:$0xff]  ;;  %v2140_v7 = vld [vmem:[%s2656_s13 + $0x8] sm:$0xff]  ;;  %v2141_v8 = vld [vmem:[%s2656_s13 + $0x10] sm:$0xff]  ;;  %v1970_v23 = vor.u32 %v2161_v20, %v1967_v22  ;;  %v1958_v27 = vor.u32 %v2160_v25, %v1957_v24  ;;  %s1715_s20 = scalar_lea.sflag [#allocation4], %s2640_s1  ;;  %s2423_s22 = scalar_lea.hbm %s3381_s7, 32 }
  0x42   : > { %1899 = vmatmul.msk.bf16.vlgmr.msra.gmra.mxu0 %vm448_vm0, %v2139_v6  ;;  %1907 = vmatmul.msk.bf16.vlgmr.msra.gmra.mxu1 %vm448_vm0, %v2139_v6  ;;  %v2142_v9 = vld [vmem:[%s2656_s13 + $0x18] sm:$0xff]  ;;  %v2143_v10 = vld [vmem:[%s2656_s13 + $0x20] sm:$0xff]  ;;  %v2144_v17 = vld [vmem:[%s2656_s13 + $0x28] sm:$0xff] }
  0x43   : > { %756 = vmatpush.bf16.msrb.mxu1 %v1974_v14  ;;  %854 = vmatpush.bf16.msrb.mxu0 %v1978_v16  ;;  %v2159_v26 = vld [vmem:[%s3376_s2 + $0x54] sm:$0xf]  ;;  %v1959_v28 = vld [vmem:[%s3376_s2 + $0x58] sm:$0xf0]  ;;  %v1949_v30 = vld [vmem:[%s3376_s2 + $0x40] sm:$0xf] }
  0x44   : > { %2195 = vmatpush.bf16.msra.mxu2 %v1966_v21  ;;  %v1962_v29 = vor.u32 %v2159_v26, %v1959_v28  ;;  %v2158_v31 = vld [vmem:[%s3376_s2 + $0x44] sm:$0xf0]  ;;  %v2157_v32 = vld [vmem:[%s3376_s2 + $0x44] sm:$0xf]  ;;  %v1951_v33 = vld [vmem:[%s3376_s2 + $0x48] sm:$0xf0] }
  0x45   : > { %v1950_v34 = vor.u32 %v2158_v31, %v1949_v30  ;;  %v1954_v35 = vor.u32 %v2157_v32, %v1951_v33  ;;  %v1941_v36 = vld [vmem:[%s3376_s2 + $0x30] sm:$0xf]  ;;  %v2156_v37 = vld [vmem:[%s3376_s2 + $0x34] sm:$0xf0]  ;;  %v2155_v38 = vld [vmem:[%s3376_s2 + $0x34] sm:$0xf] }
  0x46   : > { %v2145_v39 = vld [vmem:[%s2656_s13 + $0x30] sm:$0xff]  ;;  %v1942_v40 = vor.u32 %v2156_v37, %v1941_v36  ;;  %v1943_v41 = vld [vmem:[%s3376_s2 + $0x38] sm:$0xf0]  ;;  %v1933_v43 = vld [vmem:[%s3376_s2 + $0x20] sm:$0xf] }
  0x47   : > { %757 = vmatpush.bf16.msrb.mxu1 %v1966_v21  ;;  %855 = vmatpush.bf16.msrb.mxu0 %v1970_v23  ;;  %v1946_v42 = vor.u32 %v2155_v38, %v1943_v41  ;;  %v2154_v44 = vld [vmem:[%s3376_s2 + $0x24] sm:$0xf0]  ;;  %v2153_v45 = vld [vmem:[%s3376_s2 + $0x24] sm:$0xf]  ;;  %v1935_v47 = vld [vmem:[%s3376_s2 + $0x28] sm:$0xf0] }
  0x48   : > { %2196 = vmatpush.bf16.msra.mxu2 %v1958_v27  ;;  %v1934_v46 = vor.u32 %v2154_v44, %v1933_v43  ;;  %v1938_v48 = vor.u32 %v2153_v45, %v1935_v47  ;;  %v1925_v49 = vld [vmem:[%s3376_s2 + $0x10] sm:$0xf]  ;;  %v2152_v50 = vld [vmem:[%s3376_s2 + $0x14] sm:$0xf0]  ;;  %v2151_v51 = vld [vmem:[%s3376_s2 + $0x14] sm:$0xf] }
  0x49   : > { %v1926_v52 = vor.u32 %v2152_v50, %v1925_v49  ;;  %v1927_v53 = vld [vmem:[%s3376_s2 + $0x18] sm:$0xf0]  ;;  %v1917_v55 = vld [vmem:[%s3376_s2] sm:$0xf]  ;;  %v2150_v56 = vld [vmem:[%s3376_s2 + $0x4] sm:$0xf0] }
  0x4a   : > { %v1930_v54 = vor.u32 %v2151_v51, %v1927_v53  ;;  %v1981_v57 = vld [vmem:[%s3376_s2 + $0x80] sm:$0xf]  ;;  %v1918_v58 = vor.u32 %v2150_v56, %v1917_v55  ;;  %v2166_v59 = vld [vmem:[%s3376_s2 + $0x84] sm:$0xf0]  ;;  %v2149_v60 = vld [vmem:[%s3376_s2 + $0x4] sm:$0xf] }
  0x4b   : > { %758 = vmatpush.bf16.msrb.mxu1 %v1958_v27  ;;  %856 = vmatpush.bf16.msrb.mxu0 %v1962_v29  ;;  %v1919_v61 = vld [vmem:[%s3376_s2 + $0x8] sm:$0xf0]  ;;  %v1982_v62 = vor.u32 %v2166_v59, %v1981_v57  ;;  %v2146_v0 = vld [vmem:[%s2656_s13 + $0x38] sm:$0xff]  ;;  %v2165_v1 = vld [vmem:[%s3376_s2 + $0x84] sm:$0xf]  ;;  %s2136_s13 = sshll.u32 %s2550_s8, 3 }
  0x4c   : > { %2197 = vmatpush.bf16.msra.mxu2 %v1950_v34  ;;  %v1922_v63 = vor.u32 %v2149_v60, %v1919_v61  ;;  %v1983_v2 = vld [vmem:[%s3376_s2 + $0x88] sm:$0xf0]  ;;  %v383_v4 = vld [vmem:[#allocation7] ss:$8 sm:$0x3]  ;;  %s1725_s10 = scalar_lea.hbm %s3381_s7, %s2136_s13 }
  0x4d   : > { %812 = vmatpush.bf16.msra.mxu3 %v1982_v62  ;;  %v1986_v3 = vor.u32 %v2165_v1, %v1983_v2  ;;  %s1729_s15 = sshll.u32 %s1725_s10, 4  ;;  %s1730_s15 = int_to_ptr.hbm [resolvable:$true] %s1729_s15 }
  0x4e   : > { %s2417_s21 = sshra.s32 %s1730_s15, 4  ;;  %s2418_s21 = int_to_ptr.hbm [resolvable:$true] %s2417_s21 }
  0x4f   : > { %759 = vmatpush.bf16.msrb.mxu1 %v1950_v34  ;;  %857 = vmatpush.bf16.msrb.mxu0 %v1954_v35  ;;  %p2424_p6 = scmp.lt.s32.totalorder %s2418_s21, %s3381_s7 }
  0x50   : > { %2198 = vmatpush.bf16.msra.mxu2 %v1942_v40 }
  0x52   : > { %1900 = vmatmul.msk.bf16.gmra.mxu0 %vm448_vm0, %v2140_v7  ;;  %1908 = vmatmul.msk.bf16.gmra.mxu1 %vm448_vm0, %v2140_v7  ;;  %v2790_v7 = vperm.slane %v383_v4, 1 }
  0x53   : > { %760 = vmatpush.bf16.msrb.mxu1 %v1942_v40  ;;  %858 = vmatpush.bf16.msrb.mxu0 %v1946_v42 }
  0x54   : > { %2199 = vmatpush.bf16.msra.mxu2 %v1934_v46 }
  0x57   : > { %761 = vmatpush.bf16.msrb.mxu1 %v1934_v46  ;;  %859 = vmatpush.bf16.msrb.mxu0 %v1938_v48 }
  0x58   : > { %2200 = vmatpush.bf16.msra.mxu2 %v1926_v52 }
  0x5b   : > { %762 = vmatpush.bf16.msrb.mxu1 %v1926_v52  ;;  %860 = vmatpush.bf16.msrb.mxu0 %v1930_v54 }
  0x5c   : > { %2201 = vmatpush.bf16.msra.mxu2 %v1918_v58 }
  0x5f   : > { %763 = vmatpush.bf16.msrb.mxu1 %v1918_v58  ;;  %861 = vmatpush.bf16.msrb.mxu0 %v1922_v63 }
  0x62   : > { %1901 = vmatmul.msk.bf16.gmra.mxu0 %vm448_vm0, %v2141_v8  ;;  %1909 = vmatmul.msk.bf16.gmra.mxu1 %vm448_vm0, %v2141_v8  ;;  %v2792_v8 = vperm.slane %v383_v4, 0 }
  0x63   : > { %910 = vmatpush.bf16.msra.mxu1 %v1986_v3 }
  0x72   : > { %1902 = vmatmul.msk.bf16.gmra.mxu0 %vm448_vm0, %v2142_v9  ;;  %1910 = vmatmul.msk.bf16.gmra.mxu1 %vm448_vm0, %v2142_v9 }
  0x82   : > { %1903 = vmatmul.msk.bf16.gmra.mxu0 %vm448_vm0, %v2143_v10  ;;  %1911 = vmatmul.msk.bf16.gmra.mxu1 %vm448_vm0, %v2143_v10 }
  0x92   : > { %1904 = vmatmul.msk.bf16.gmra.mxu0 %vm448_vm0, %v2144_v17  ;;  %1912 = vmatmul.msk.bf16.gmra.mxu1 %vm448_vm0, %v2144_v17 }
  0xa2   : > { %1905 = vmatmul.msk.bf16.gmra.mxu0 %vm448_vm0, %v2145_v39  ;;  %1913 = vmatmul.msk.bf16.gmra.mxu1 %vm448_vm0, %v2145_v39 }
  0xb2   : > { %1906 = vmatmul.msk.bf16.gmra.mxu0 %vm448_vm0, %v2146_v0  ;;  %1914 = vmatmul.msk.bf16.gmra.mxu1 %vm448_vm0, %v2146_v0 }
  0xbf   : > { %v482_v5 = vpop.f32.mrf.mxu0  ;;  %v531_v6 = vpop.f32.mrf.mxu1 }
  0xc0   : > { %v2795_v9 = vadd.f32 %v531_v6, %v2790_v7  ;;  %v2798_v10 = vadd.f32 %v482_v5, %v2792_v8 }
  0xc2   : > { %v572_v14 = vmax.f32 %v2795_v9, 0.0  ;;  %v571_v16 = vmax.f32 %v2798_v10, 0.0 }
  0xc7   : > { %v484_v11 = vpop.f32.mrf.mxu0  ;;  %v533_v13 = vpop.f32.mrf.mxu1 }
  0xc8   : > { %v2801_v12 = vadd.f32 %v484_v11, %v2792_v8  ;;  %v2805_v15 = vadd.f32 %v533_v13, %v2790_v7 }
  0xca   : > { %v573_v17 = vmax.f32 %v2801_v12, 0.0  ;;  %v574_v18 = vmax.f32 %v2805_v15, 0.0 }
  0xcc   : > { %v603_v19 = vpack.c.bf16 %v573_v17, %v571_v16  ;;  %v604_v20 = vpack.c.bf16 %v574_v18, %v572_v14 }
  0xce   : > { %764 = vmatmul.bf16.vlgmr.msrb.gmra.mxu1 %v603_v19  ;;  %862 = vmatmul.bf16.vlgmr.msrb.gmra.mxu0 %v603_v19 }
  0xcf   : > { %1987 = vmatmul.msk.bf16.vlgmr.msra.gmra.mxu3 %vm448_vm0, %v604_v20  ;;  %v487_v21 = vpop.f32.mrf.mxu0  ;;  %v536_v22 = vpop.f32.mrf.mxu1 }
  0xd0   : > { %v2820_v23 = vadd.f32 %v487_v21, %v2792_v8  ;;  %v2823_v24 = vadd.f32 %v536_v22, %v2790_v7 }
  0xd2   : > { %v575_v26 = vmax.f32 %v2820_v23, 0.0  ;;  %v576_v29 = vmax.f32 %v2823_v24, 0.0 }
  0xd7   : > { %v489_v25 = vpop.f32.mrf.mxu0  ;;  %v538_v28 = vpop.f32.mrf.mxu1 }
  0xd8   : > { %v2827_v27 = vadd.f32 %v489_v25, %v2792_v8  ;;  %v2831_v30 = vadd.f32 %v538_v28, %v2790_v7 }
  0xda   : > { %v577_v31 = vmax.f32 %v2827_v27, 0.0  ;;  %v578_v32 = vmax.f32 %v2831_v30, 0.0 }
  0xdc   : > { %v605_v33 = vpack.c.bf16 %v577_v31, %v575_v26  ;;  %v606_v34 = vpack.c.bf16 %v578_v32, %v576_v29 }
  0xde   : > { %769 = vmatmul.bf16.vlgmr.msra.gmra.mxu2 %v605_v33  ;;  %867 = vmatmul.bf16.gmra.mxu0 %v605_v33 }
  0xdf   : > { %1988 = vmatmul.msk.bf16.gmra.mxu3 %vm448_vm0, %v606_v34  ;;  %1995 = vmatmul.msk.bf16.vlgmr.msra.gmra.mxu1 %vm448_vm0, %v604_v20  ;;  %v492_v35 = vpop.f32.mrf.mxu0  ;;  %v541_v36 = vpop.f32.mrf.mxu1 }
  0xe0   : > { %v2846_v37 = vadd.f32 %v492_v35, %v2792_v8  ;;  %v2849_v38 = vadd.f32 %v541_v36, %v2790_v7 }
  0xe2   : > { %v3404_v40 = vmax.f32 %v2846_v37, 0.0  ;;  %v580_v43 = vmax.f32 %v2849_v38, 0.0 }
  0xe7   : > { %v494_v39 = vpop.f32.mrf.mxu0  ;;  %v543_v42 = vpop.f32.mrf.mxu1 }
  0xe8   : > { %v2853_v41 = vadd.f32 %v494_v39, %v2792_v8  ;;  %v2857_v44 = vadd.f32 %v543_v42, %v2790_v7 }
  0xea   : > { %v3402_v45 = vmax.f32 %v2853_v41, 0.0  ;;  %v3403_v46 = vmax.f32 %v2857_v44, 0.0  ;;  %v3414_v38 = vmax.f32 %v2857_v44, 0.0 }
  0xec   : > { %v607_v47 = vpack.c.bf16 %v3402_v45, %v3404_v40  ;;  %v608_v48 = vpack.c.bf16 %v3403_v46, %v580_v43 }
  0xee   : > { %774 = vmatmul.bf16.gmra.mxu2 %v607_v47  ;;  %872 = vmatmul.bf16.gmra.mxu0 %v607_v47 }
  0xef   : > { %1989 = vmatmul.msk.bf16.gmra.mxu3 %vm448_vm0, %v608_v48  ;;  %1996 = vmatmul.msk.bf16.gmra.mxu1 %vm448_vm0, %v606_v34  ;;  %v497_v49 = vpop.f32.mrf.mxu0  ;;  %v546_v50 = vpop.f32.mrf.mxu1 }
  0xf0   : > { %v2872_v51 = vadd.f32 %v497_v49, %v2792_v8  ;;  %v2875_v52 = vadd.f32 %v546_v50, %v2790_v7 }
  0xf2   : > { %v3400_v54 = vmax.f32 %v2872_v51, 0.0  ;;  %v3401_v57 = vmax.f32 %v2875_v52, 0.0 }
  0xf7   : > { %v499_v53 = vpop.f32.mrf.mxu0  ;;  %v548_v56 = vpop.f32.mrf.mxu1 }
  0xf8   : > { %v2879_v55 = vadd.f32 %v499_v53, %v2792_v8  ;;  %v2883_v58 = vadd.f32 %v548_v56, %v2790_v7 }
  0xfa   : > { %v3394_v59 = vmax.f32 %v2879_v55, 0.0  ;;  %v3399_v60 = vmax.f32 %v2883_v58, 0.0 }
  0xfc   : > { %v609_v61 = vpack.c.bf16 %v3394_v59, %v3400_v54  ;;  %v610_v62 = vpack.c.bf16 %v3399_v60, %v3401_v57 }
  0xfe   : > { %779 = vmatmul.bf16.gmra.mxu2 %v609_v61  ;;  %877 = vmatmul.bf16.gmra.mxu0 %v609_v61 }
  0xff   : > { %1990 = vmatmul.msk.bf16.gmra.mxu3 %vm448_vm0, %v610_v62  ;;  %1997 = vmatmul.msk.bf16.gmra.mxu1 %vm448_vm0, %v608_v48  ;;  %v502_v63 = vpop.f32.mrf.mxu0  ;;  %v551_v0 = vpop.f32.mrf.mxu1 }
 0x100   : > { %v2898_v1 = vadd.f32 %v502_v63, %v2792_v8  ;;  %v2901_v2 = vadd.f32 %v551_v0, %v2790_v7  ;;  %v2182_v63 = vld [vmem:[%s3377_s3 + $0x74] sm:$0xf0]  ;;  %v2181_v0 = vld [vmem:[%s3377_s3 + $0x74] sm:$0xf] }
 0x102   : > { %v3392_v4 = vmax.f32 %v2898_v1, 0.0  ;;  %v3393_v11 = vmax.f32 %v2901_v2, 0.0 }
 0x107   : > { %v504_v3 = vpop.f32.mrf.mxu0  ;;  %v553_v6 = vpop.f32.mrf.mxu1 }
 0x108   : > { %v2905_v5 = vadd.f32 %v504_v3, %v2792_v8  ;;  %v2909_v13 = vadd.f32 %v553_v6, %v2790_v7 }
 0x10a   : > { %v3386_v19 = vmax.f32 %v2905_v5, 0.0  ;;  %v3391_v20 = vmax.f32 %v2909_v13, 0.0 }
 0x10c   : > { %v611_v21 = vpack.c.bf16 %v3386_v19, %v3392_v4  ;;  %v612_v22 = vpack.c.bf16 %v3391_v20, %v3393_v11 }
 0x10e   : > { %784 = vmatmul.bf16.gmra.mxu2 %v611_v21  ;;  %882 = vmatmul.bf16.gmra.mxu0 %v611_v21  ;;  %v2063_v21 = vld [vmem:[%s3377_s3 + $0x78] sm:$0xf0] }
 0x10f   : > { %1991 = vmatmul.msk.bf16.gmra.mxu3 %vm448_vm0, %v612_v22  ;;  %1998 = vmatmul.msk.bf16.gmra.mxu1 %vm448_vm0, %v610_v62  ;;  %v507_v25 = vpop.f32.mrf.mxu0  ;;  %v556_v28 = vpop.f32.mrf.mxu1  ;;  %v2061_v62 = vld [vmem:[%s3377_s3 + $0x70] sm:$0xf] }
 0x110   : > { %v2924_v33 = vadd.f32 %v507_v25, %v2792_v8  ;;  %v2927_v34 = vadd.f32 %v556_v28, %v2790_v7  ;;  %v2062_v6 = vor.u32 %v2182_v63, %v2061_v62  ;;  %v2180_v25 = vld [vmem:[%s3377_s3 + $0x64] sm:$0xf0]  ;;  %v2066_v28 = vor.u32 %v2181_v0, %v2063_v21  ;;  %v2045_v63 = vld [vmem:[%s3377_s3 + $0x50] sm:$0xf]  ;;  %v2178_v0 = vld [vmem:[%s3377_s3 + $0x54] sm:$0xf0] }
 0x112   : > { %v3384_v36 = vmax.f32 %v2924_v33, 0.0  ;;  %v3385_v47 = vmax.f32 %v2927_v34, 0.0  ;;  %1132 = vmatpush.bf16.msrb.mxu3 %v2062_v6  ;;  %1230 = vmatpush.bf16.msra.mxu0 %v2066_v28  ;;  %v2047_v6 = vld [vmem:[%s3377_s3 + $0x58] sm:$0xf0] }
 0x117   : > { %v509_v35 = vpop.f32.mrf.mxu0  ;;  %v558_v42 = vpop.f32.mrf.mxu1 }
 0x118   : > { %v2931_v39 = vadd.f32 %v509_v35, %v2792_v8  ;;  %v2935_v48 = vadd.f32 %v558_v42, %v2790_v7  ;;  %v2179_v35 = vld [vmem:[%s3377_s3 + $0x64] sm:$0xf]  ;;  %v2055_v42 = vld [vmem:[%s3377_s3 + $0x68] sm:$0xf0] }
 0x119   : > { %v2058_v62 = vor.u32 %v2179_v35, %v2055_v42 }
 0x11a   : > { %v3382_v49 = vmax.f32 %v2931_v39, 0.0  ;;  %v3383_v50 = vmax.f32 %v2935_v48, 0.0 }
 0x11b   : > { %1231 = vmatpush.bf16.msra.mxu0 %v2058_v62 }
 0x11c   : > { %v613_v53 = vpack.c.bf16 %v3382_v49, %v3384_v36  ;;  %v614_v56 = vpack.c.bf16 %v3383_v50, %v3385_v47  ;;  %v2177_v49 = vld [vmem:[%s3377_s3 + $0x54] sm:$0xf] }
 0x11d   : > { %v2050_v35 = vor.u32 %v2177_v49, %v2047_v6  ;;  %v2037_v49 = vld [vmem:[%s3377_s3 + $0x40] sm:$0xf] }
 0x11e   : > { %789 = vmatmul.bf16.gmra.mxu2 %v613_v53  ;;  %887 = vmatmul.bf16.gmra.mxu0 %v613_v53 }
 0x11f   : > { %1992 = vmatmul.msk.bf16.gmra.mxu3 %vm448_vm0, %v614_v56  ;;  %1999 = vmatmul.msk.bf16.gmra.mxu1 %vm448_vm0, %v612_v22  ;;  %v512_v61 = vpop.f32.mrf.mxu0  ;;  %v561_v3 = vpop.f32.mrf.mxu1  ;;  %v2053_v22 = vld [vmem:[%s3377_s3 + $0x60] sm:$0xf] }
 0x120   : > { %v2054_v53 = vor.u32 %v2180_v25, %v2053_v22  ;;  %v2980_v21 = vadd.f32 %v512_v61, %v2792_v8  ;;  %v2989_v22 = vadd.f32 %v561_v3, %v2790_v7  ;;  %v2046_v25 = vor.u32 %v2178_v0, %v2045_v63  ;;  %1232 = vmatpush.bf16.msra.mxu0 %v2050_v35  ;;  %v2175_v63 = vld [vmem:[%s3377_s3 + $0x44] sm:$0xf]  ;;  %v2039_v0 = vld [vmem:[%s3377_s3 + $0x48] sm:$0xf0]  ;;  %v2029_v35 = vld [vmem:[%s3377_s3 + $0x30] sm:$0xf] }
 0x122   : > { %1133 = vmatpush.bf16.msrb.mxu3 %v2054_v53  ;;  %v3389_v42 = vmax.f32 %v2980_v21, 0.0  ;;  %v3390_v36 = vmax.f32 %v2989_v22, 0.0  ;;  %v2176_v53 = vld [vmem:[%s3377_s3 + $0x44] sm:$0xf0] }
 0x123   : > { %v2038_v62 = vor.u32 %v2176_v53, %v2037_v49  ;;  %v2174_v49 = vld [vmem:[%s3377_s3 + $0x34] sm:$0xf0]  ;;  %v2173_v53 = vld [vmem:[%s3377_s3 + $0x34] sm:$0xf] }
 0x126   : > { %1134 = vmatpush.bf16.msrb.mxu3 %v2046_v25  ;;  %v2042_v25 = vor.u32 %v2175_v63, %v2039_v0 }
 0x127   : > { %v514_v28 = vpop.f32.mrf.mxu0  ;;  %v563_v50 = vpop.f32.mrf.mxu1 }
 0x128   : > { %v2993_v61 = vadd.f32 %v514_v28, %v2792_v8  ;;  %v2997_v47 = vadd.f32 %v563_v50, %v2790_v7  ;;  %1233 = vmatpush.bf16.msra.mxu0 %v2042_v25  ;;  %v2171_v25 = vld [vmem:[%s3377_s3 + $0x24] sm:$0xf] }
 0x12a   : > { %v3387_v19 = vmax.f32 %v2993_v61, 0.0  ;;  %v3388_v3 = vmax.f32 %v2997_v47, 0.0  ;;  %1135 = vmatpush.bf16.msrb.mxu3 %v2038_v62 }
 0x12c   : > { %v615_v50 = vpack.c.bf16 %v3387_v19, %v3389_v42  ;;  %v616_v6 = vpack.c.bf16 %v3388_v3, %v3390_v36  ;;  %v2021_v19 = vld [vmem:[%s3377_s3 + $0x20] sm:$0xf]  ;;  %v2172_v3 = vld [vmem:[%s3377_s3 + $0x24] sm:$0xf0] }
 0x12d   : > { %v2022_v62 = vor.u32 %v2172_v3, %v2021_v19 }
 0x12e   : > { %794 = vmatmul.bf16.gmra.mxu2 %v615_v50  ;;  %892 = vmatmul.bf16.gmra.mxu0 %v615_v50  ;;  %v2030_v50 = vor.u32 %v2174_v49, %v2029_v35  ;;  %v2023_v35 = vld [vmem:[%s3377_s3 + $0x28] sm:$0xf0] }
 0x12f   : > { %1993 = vmatmul.msk.bf16.gmra.mxu3 %vm448_vm0, %v616_v6  ;;  %2000 = vmatmul.msk.bf16.gmra.mxu1 %vm448_vm0, %v614_v56  ;;  %v517_v28 = vpop.f32.mrf.mxu0  ;;  %v566_v63 = vpop.f32.mrf.mxu1  ;;  %v2031_v56 = vld [vmem:[%s3377_s3 + $0x38] sm:$0xf0]  ;;  %v2026_v19 = vor.u32 %v2171_v25, %v2023_v35 }
 0x130   : > { %v2034_v0 = vor.u32 %v2173_v53, %v2031_v56  ;;  %v3042_v42 = vadd.f32 %v517_v28, %v2792_v8  ;;  %1136 = vmatpush.bf16.msrb.mxu3 %v2030_v50  ;;  %v3051_v49 = vadd.f32 %v566_v63, %v2790_v7  ;;  %v2183_v53 = vld [vmem:[%s3377_s3 + $0x84] sm:$0xf]  ;;  %v2071_v28 = vld [vmem:[%s3377_s3 + $0x88] sm:$0xf0]  ;;  %v2013_v56 = vld [vmem:[%s3377_s3 + $0x10] sm:$0xf] }
 0x131   : > { %v2074_v3 = vor.u32 %v2183_v53, %v2071_v28  ;;  %v2170_v63 = vld [vmem:[%s3377_s3 + $0x14] sm:$0xf0]  ;;  %v2015_v53 = vld [vmem:[%s3377_s3 + $0x18] sm:$0xf0] }
 0x132   : > { %1234 = vmatpush.bf16.msra.mxu0 %v2034_v0  ;;  %v2169_v0 = vld [vmem:[%s3377_s3 + $0x14] sm:$0xf]  ;;  %v3397_v36 = vmax.f32 %v3042_v42, 0.0  ;;  %v2014_v35 = vor.u32 %v2170_v63, %v2013_v56  ;;  %v3398_v28 = vmax.f32 %v3051_v49, 0.0  ;;  %v2007_v56 = vld [vmem:[%s3377_s3 + $0x8] sm:$0xf0] }
 0x133   : > { %1286 = vmatpush.bf16.msrb.mxu1 %v2074_v3  ;;  %v2018_v11 = vor.u32 %v2169_v0, %v2015_v53  ;;  %v2168_v3 = vld [vmem:[%s3377_s3 + $0x4] sm:$0xf0] }
 0x134   : > { %1137 = vmatpush.bf16.msrb.mxu3 %v2022_v62  ;;  %v2005_v62 = vld [vmem:[%s3377_s3] sm:$0xf] }
 0x136   : > { %1235 = vmatpush.bf16.msra.mxu0 %v2026_v19  ;;  %v2006_v19 = vor.u32 %v2168_v3, %v2005_v62  ;;  %v385_v3 = vld [vmem:[#allocation7 + $0x1] ss:$8 sm:$0x3] }
 0x137   : > { %v519_v50 = vpop.f32.mrf.mxu0  ;;  %v568_v25 = vpop.f32.mrf.mxu1 }
 0x138   : > { %v3070_v20 = vadd.f32 %v519_v50, %v2792_v8  ;;  %v3077_v4 = vadd.f32 %v568_v25, %v2790_v7  ;;  %1138 = vmatpush.bf16.msrb.mxu3 %v2014_v35  ;;  %v2167_v50 = vld [vmem:[%s3377_s3 + $0x4] sm:$0xf]  ;;  %v2069_v25 = vld [vmem:[%s3377_s3 + $0x80] sm:$0xf]  ;;  %v2184_v35 = vld [vmem:[%s3377_s3 + $0x84] sm:$0xf0] }
 0x139   : > { %v2010_v0 = vor.u32 %v2167_v50, %v2007_v56  ;;  %v2070_v53 = vor.u32 %v2184_v35, %v2069_v25  ;;  %v3110_v50 = vperm.slane %v385_v3, 0  ;;  %v3114_v35 = vperm.slane %v385_v3, 1 }
 0x13a   : > { %v3395_v59 = vmax.f32 %v3070_v20, 0.0  ;;  %v3396_v8 = vmax.f32 %v3077_v4, 0.0  ;;  %1236 = vmatpush.bf16.msra.mxu0 %v2018_v11 }
 0x13b   : > { %1188 = vmatpush.bf16.msrb.mxu2 %v2070_v53 }
 0x13c   : > { %v617_v7 = vpack.c.bf16 %v3395_v59, %v3397_v36  ;;  %v618_v63 = vpack.c.bf16 %v3396_v8, %v3398_v28  ;;  %1139 = vmatpush.bf16.msrb.mxu3 %v2006_v19 }
 0x13e   : > { %799 = vmatmul.bf16.gmra.mxu2 %v617_v7  ;;  %897 = vmatmul.bf16.gmra.mxu0 %v617_v7 }
 0x13f   : > { %1994 = vmatmul.msk.bf16.gmra.mxu3 %vm448_vm0, %v618_v63  ;;  %2001 = vmatmul.msk.bf16.gmra.mxu1 %vm448_vm0, %v616_v6 }
 0x140   : > { %1237 = vmatpush.bf16.msra.mxu0 %v2010_v0 }
 0x14b   : > { %v765_v11 = vpop.f32.mrf.mxu1  ;;  %v863_v62 = vpop.f32.mrf.mxu0 }
 0x14c   : > { %v766_v59 = vadd.f32 %v765_v11, %v3110_v50  ;;  %v864_v54 = vadd.f32 %v863_v62, %v3114_v35 }
 0x14f   : > { %2002 = vmatmul.msk.bf16.gmra.mxu1 %vm448_vm0, %v618_v63 }
 0x152   : > { %v814_v7 = vpop.f32.mrf.mxu3 }
 0x153   : > { %v767_v6 = vpop.f32.mrf.mxu1  ;;  %v865_v56 = vpop.f32.mrf.mxu0  ;;  %v815_v8 = vadd.f32 %v814_v7, %v766_v59 }
 0x154   : > { %v768_v36 = vadd.f32 %v767_v6, %v3110_v50  ;;  %v866_v11 = vadd.f32 %v865_v56, %v3114_v35 }
 0x155   : > { %v952_v53 = vmax.f32 %v815_v8, 0.0 }
 0x15a   : > { %v816_v28 = vpop.f32.mrf.mxu3 }
 0x15b   : > { %v817_v25 = vadd.f32 %v816_v28, %v768_v36  ;;  %v868_v19 = vpop.f32.mrf.mxu0 }
 0x15c   : > { %v912_v0 = vpop.f32.mrf.mxu1 }
 0x15d   : > { %v954_v60 = vmax.f32 %v817_v25, 0.0  ;;  %v913_v59 = vadd.f32 %v912_v0, %v864_v54 }
 0x15f   : > { %v984_v63 = vpack.c.bf16 %v954_v60, %v952_v53  ;;  %v953_v28 = vmax.f32 %v913_v59, 0.0 }
 0x161   : > { %1140 = vmatmul.bf16.vlgmr.msrb.gmra.mxu3 %v984_v63  ;;  %1238 = vmatmul.bf16.vlgmr.msra.gmra.mxu0 %v984_v63  ;;  %v770_v57 = vpop.f32.mrf.mxu2 }
 0x162   : > { %v819_v45 = vpop.f32.mrf.mxu3  ;;  %v771_v36 = vadd.f32 %v770_v57, %v3110_v50  ;;  %v869_v57 = vadd.f32 %v868_v19, %v3114_v35 }
 0x163   : > { %v870_v7 = vpop.f32.mrf.mxu0 }
 0x164   : > { %v914_v6 = vpop.f32.mrf.mxu1  ;;  %v820_v25 = vadd.f32 %v819_v45, %v771_v36  ;;  %v871_v45 = vadd.f32 %v870_v7, %v3114_v35 }
 0x165   : > { %v915_v46 = vadd.f32 %v914_v6, %v866_v11 }
 0x166   : > { %v956_v0 = vmax.f32 %v820_v25, 0.0 }
 0x167   : > { %v955_v3 = vmax.f32 %v915_v46, 0.0 }
 0x169   : > { %v985_v40 = vpack.c.bf16 %v955_v3, %v953_v28  ;;  %v772_v8 = vpop.f32.mrf.mxu2 }
 0x16a   : > { %v773_v60 = vadd.f32 %v772_v8, %v3110_v50  ;;  %v821_v62 = vpop.f32.mrf.mxu3 }
 0x16b   : > { %2075 = vmatmul.msk.bf16.vlgmr.msrb.gmra.mxu2 %vm448_vm0, %v985_v40  ;;  %2083 = vmatmul.msk.bf16.vlgmr.msrb.gmra.mxu1 %vm448_vm0, %v985_v40  ;;  %v873_v53 = vpop.f32.mrf.mxu0 }
 0x16c   : > { %v822_v56 = vadd.f32 %v821_v62, %v773_v60  ;;  %v917_v54 = vpop.f32.mrf.mxu1 }
 0x16d   : > { %v918_v6 = vadd.f32 %v917_v54, %v869_v57 }
 0x16e   : > { %v958_v63 = vmax.f32 %v822_v56, 0.0 }
 0x16f   : > { %v957_v8 = vmax.f32 %v918_v6, 0.0 }
 0x170   : > { %v986_v11 = vpack.c.bf16 %v958_v63, %v956_v0 }
 0x171   : > { %v775_v59 = vpop.f32.mrf.mxu2 }
 0x172   : > { %v824_v46 = vpop.f32.mrf.mxu3  ;;  %1145 = vmatmul.bf16.gmra.mxu3 %v986_v11  ;;  %1243 = vmatmul.bf16.gmra.mxu0 %v986_v11  ;;  %v776_v40 = vadd.f32 %v775_v59, %v3110_v50  ;;  %v874_v59 = vadd.f32 %v873_v53, %v3114_v35 }
 0x173   : > { %v875_v36 = vpop.f32.mrf.mxu0 }
 0x174   : > { %v919_v28 = vpop.f32.mrf.mxu1  ;;  %v825_v56 = vadd.f32 %v824_v46, %v776_v40  ;;  %v876_v46 = vadd.f32 %v875_v36, %v3114_v35 }
 0x175   : > { %v920_v3 = vadd.f32 %v919_v28, %v871_v45 }
 0x176   : > { %v960_v11 = vmax.f32 %v825_v56, 0.0 }
 0x177   : > { %v959_v60 = vmax.f32 %v920_v3, 0.0 }
 0x179   : > { %v777_v62 = vpop.f32.mrf.mxu2  ;;  %v987_v25 = vpack.c.bf16 %v959_v60, %v957_v8 }
 0x17a   : > { %v778_v0 = vadd.f32 %v777_v62, %v3110_v50  ;;  %v826_v19 = vpop.f32.mrf.mxu3 }
 0x17b   : > { %2076 = vmatmul.msk.bf16.gmra.mxu2 %vm448_vm0, %v987_v25  ;;  %2084 = vmatmul.msk.bf16.gmra.mxu1 %vm448_vm0, %v987_v25  ;;  %v878_v63 = vpop.f32.mrf.mxu0 }
 0x17c   : > { %v827_v7 = vadd.f32 %v826_v19, %v778_v0  ;;  %v922_v54 = vpop.f32.mrf.mxu1 }
 0x17d   : > { %v923_v3 = vadd.f32 %v922_v54, %v874_v59 }
 0x17e   : > { %v962_v57 = vmax.f32 %v827_v7, 0.0 }
 0x17f   : > { %v961_v25 = vmax.f32 %v923_v3, 0.0 }
 0x180   : > { %v988_v45 = vpack.c.bf16 %v962_v57, %v960_v11 }
 0x181   : > { %v780_v6 = vpop.f32.mrf.mxu2 }
 0x182   : > { %v829_v28 = vpop.f32.mrf.mxu3  ;;  %1150 = vmatmul.bf16.gmra.mxu3 %v988_v45  ;;  %1248 = vmatmul.bf16.gmra.mxu0 %v988_v45  ;;  %v781_v62 = vadd.f32 %v780_v6, %v3110_v50  ;;  %v879_v6 = vadd.f32 %v878_v63, %v3114_v35 }
 0x183   : > { %v880_v40 = vpop.f32.mrf.mxu0 }
 0x184   : > { %v924_v8 = vpop.f32.mrf.mxu1  ;;  %v830_v7 = vadd.f32 %v829_v28, %v781_v62  ;;  %v881_v28 = vadd.f32 %v880_v40, %v3114_v35 }
 0x185   : > { %v925_v60 = vadd.f32 %v924_v8, %v876_v46 }
 0x186   : > { %v964_v45 = vmax.f32 %v830_v7, 0.0 }
 0x187   : > { %v963_v0 = vmax.f32 %v925_v60, 0.0 }
 0x189   : > { %v782_v19 = vpop.f32.mrf.mxu2  ;;  %v989_v56 = vpack.c.bf16 %v963_v0, %v961_v25 }
 0x18a   : > { %v783_v11 = vadd.f32 %v782_v19, %v3110_v50  ;;  %v831_v53 = vpop.f32.mrf.mxu3 }
 0x18b   : > { %2077 = vmatmul.msk.bf16.gmra.mxu2 %vm448_vm0, %v989_v56  ;;  %2085 = vmatmul.msk.bf16.gmra.mxu1 %vm448_vm0, %v989_v56  ;;  %v883_v57 = vpop.f32.mrf.mxu0 }
 0x18c   : > { %v832_v36 = vadd.f32 %v831_v53, %v783_v11  ;;  %v927_v54 = vpop.f32.mrf.mxu1 }
 0x18d   : > { %v928_v60 = vadd.f32 %v927_v54, %v879_v6 }
 0x18e   : > { %v966_v59 = vmax.f32 %v832_v36, 0.0 }
 0x18f   : > { %v965_v56 = vmax.f32 %v928_v60, 0.0 }
 0x190   : > { %v990_v46 = vpack.c.bf16 %v966_v59, %v964_v45 }
 0x191   : > { %v785_v3 = vpop.f32.mrf.mxu2 }
 0x192   : > { %v834_v8 = vpop.f32.mrf.mxu3  ;;  %1155 = vmatmul.bf16.gmra.mxu3 %v990_v46  ;;  %1253 = vmatmul.bf16.gmra.mxu0 %v990_v46  ;;  %v786_v19 = vadd.f32 %v785_v3, %v3110_v50  ;;  %v884_v3 = vadd.f32 %v883_v57, %v3114_v35 }
 0x193   : > { %v885_v62 = vpop.f32.mrf.mxu0 }
 0x194   : > { %v929_v25 = vpop.f32.mrf.mxu1  ;;  %v835_v36 = vadd.f32 %v834_v8, %v786_v19  ;;  %v886_v8 = vadd.f32 %v885_v62, %v3114_v35 }
 0x195   : > { %v930_v0 = vadd.f32 %v929_v25, %v881_v28 }
 0x196   : > { %v968_v54 = vmax.f32 %v835_v36, 0.0 }
 0x197   : > { %v967_v11 = vmax.f32 %v930_v0, 0.0 }
 0x199   : > { %v787_v53 = vpop.f32.mrf.mxu2  ;;  %v991_v7 = vpack.c.bf16 %v967_v11, %v965_v56 }
 0x19a   : > { %v788_v45 = vadd.f32 %v787_v53, %v3110_v50  ;;  %v836_v63 = vpop.f32.mrf.mxu3 }
 0x19b   : > { %2078 = vmatmul.msk.bf16.gmra.mxu2 %vm448_vm0, %v991_v7  ;;  %2086 = vmatmul.msk.bf16.gmra.mxu1 %vm448_vm0, %v991_v7  ;;  %v888_v6 = vpop.f32.mrf.mxu0 }
 0x19c   : > { %v837_v59 = vadd.f32 %v836_v63, %v788_v45  ;;  %v932_v40 = vpop.f32.mrf.mxu1 }
 0x19d   : > { %v933_v0 = vadd.f32 %v932_v40, %v884_v3 }
 0x19e   : > { %v970_v46 = vmax.f32 %v837_v59, 0.0 }
 0x19f   : > { %v969_v53 = vmax.f32 %v933_v0, 0.0 }
 0x1a0   : > { %v992_v28 = vpack.c.bf16 %v970_v46, %v968_v54 }
 0x1a1   : > { %v790_v60 = vpop.f32.mrf.mxu2 }
 0x1a2   : > { %v839_v25 = vpop.f32.mrf.mxu3  ;;  %1160 = vmatmul.bf16.gmra.mxu3 %v992_v28  ;;  %1258 = vmatmul.bf16.gmra.mxu0 %v992_v28  ;;  %v791_v11 = vadd.f32 %v790_v60, %v3110_v50  ;;  %v889_v60 = vadd.f32 %v888_v6, %v3114_v35 }
 0x1a3   : > { %v890_v45 = vpop.f32.mrf.mxu0 }
 0x1a4   : > { %v934_v19 = vpop.f32.mrf.mxu1  ;;  %v840_v59 = vadd.f32 %v839_v25, %v791_v11  ;;  %v891_v25 = vadd.f32 %v890_v45, %v3114_v35 }
 0x1a5   : > { %v935_v56 = vadd.f32 %v934_v19, %v886_v8 }
 0x1a6   : > { %v972_v40 = vmax.f32 %v840_v59, 0.0 }
 0x1a7   : > { %v971_v7 = vmax.f32 %v935_v56, 0.0 }
 0x1a9   : > { %v993_v36 = vpack.c.bf16 %v971_v7, %v969_v53  ;;  %v792_v63 = vpop.f32.mrf.mxu2 }
 0x1aa   : > { %v793_v54 = vadd.f32 %v792_v63, %v3110_v50  ;;  %v841_v57 = vpop.f32.mrf.mxu3 }
 0x1ab   : > { %2079 = vmatmul.msk.bf16.gmra.mxu2 %vm448_vm0, %v993_v36  ;;  %2087 = vmatmul.msk.bf16.gmra.mxu1 %vm448_vm0, %v993_v36  ;;  %v893_v0 = vpop.f32.mrf.mxu0 }
 0x1ac   : > { %v842_v46 = vadd.f32 %v841_v57, %v793_v54  ;;  %v937_v62 = vpop.f32.mrf.mxu1 }
 0x1ad   : > { %v938_v56 = vadd.f32 %v937_v62, %v889_v60 }
 0x1ae   : > { %v974_v28 = vmax.f32 %v842_v46, 0.0 }
 0x1af   : > { %v973_v36 = vmax.f32 %v938_v56, 0.0 }
 0x1b0   : > { %v994_v3 = vpack.c.bf16 %v974_v28, %v972_v40 }
 0x1b1   : > { %v795_v8 = vpop.f32.mrf.mxu2 }
 0x1b2   : > { %v844_v19 = vpop.f32.mrf.mxu3  ;;  %1165 = vmatmul.bf16.gmra.mxu3 %v994_v3  ;;  %1263 = vmatmul.bf16.gmra.mxu0 %v994_v3  ;;  %v796_v7 = vadd.f32 %v795_v8, %v3110_v50  ;;  %v894_v8 = vadd.f32 %v893_v0, %v3114_v35 }
 0x1b3   : > { %v895_v40 = vpop.f32.mrf.mxu0 }
 0x1b4   : > { %v939_v11 = vpop.f32.mrf.mxu1  ;;  %v845_v57 = vadd.f32 %v844_v19, %v796_v7  ;;  %v2192_v19 = vld [vmem:[#allocation5 + $0x38] sm:$0xff] }
 0x1b5   : > { %v940_v53 = vadd.f32 %v939_v11, %v891_v25  ;;  %v896_v11 = vadd.f32 %v895_v40, %v3114_v35  ;;  %1578 = vmatpush.bf16.msra.mxu3 %v2192_v19 }
 0x1b6   : > { %v976_v62 = vmax.f32 %v845_v57, 0.0  ;;  %v2191_v57 = vld [vmem:[#allocation5 + $0x30] sm:$0xff] }
 0x1b7   : > { %v975_v63 = vmax.f32 %v940_v53, 0.0 }
 0x1b9   : > { %v995_v54 = vpack.c.bf16 %v975_v63, %v973_v36  ;;  %v797_v59 = vpop.f32.mrf.mxu2  ;;  %1579 = vmatpush.bf16.msra.mxu3 %v2191_v57 }
 0x1ba   : > { %v798_v46 = vadd.f32 %v797_v59, %v3110_v50  ;;  %v846_v6 = vpop.f32.mrf.mxu3  ;;  %v2193_v59 = vld [vmem:[#allocation5 + $0x40] sm:$0xff] }
 0x1bb   : > { %2080 = vmatmul.msk.bf16.gmra.mxu2 %vm448_vm0, %v995_v54  ;;  %2088 = vmatmul.msk.bf16.gmra.mxu1 %vm448_vm0, %v995_v54  ;;  %v898_v63 = vpop.f32.mrf.mxu0 }
 0x1bc   : > { %v847_v28 = vadd.f32 %v846_v6, %v798_v46  ;;  %v942_v45 = vpop.f32.mrf.mxu1  ;;  %1634 = vmatpush.bf16.msra.mxu2 %v2193_v59 }
 0x1bd   : > { %v943_v53 = vadd.f32 %v942_v45, %v894_v8 }
 0x1be   : > { %v978_v3 = vmax.f32 %v847_v28, 0.0 }
 0x1bf   : > { %v977_v46 = vmax.f32 %v943_v53, 0.0 }
 0x1c0   : > { %v996_v60 = vpack.c.bf16 %v978_v3, %v976_v62 }
 0x1c1   : > { %v800_v25 = vpop.f32.mrf.mxu2 }
 0x1c2   : > { %v849_v56 = vpop.f32.mrf.mxu3  ;;  %1170 = vmatmul.bf16.gmra.mxu3 %v996_v60  ;;  %1268 = vmatmul.bf16.gmra.mxu0 %v996_v60  ;;  %v801_v54 = vadd.f32 %v800_v25, %v3110_v50  ;;  %v2190_v60 = vld [vmem:[#allocation5 + $0x28] sm:$0xff] }
 0x1c3   : > { %1580 = vmatpush.bf16.msra.mxu3 %v2190_v60  ;;  %v900_v53 = vpop.f32.mrf.mxu0 }
 0x1c4   : > { %v944_v7 = vpop.f32.mrf.mxu1  ;;  %v850_v62 = vadd.f32 %v849_v56, %v801_v54  ;;  %v901_v56 = vadd.f32 %v900_v53, %v3114_v35  ;;  %v389_v53 = vld [vmem:[#allocation7 + $0x3] ss:$8 sm:$0x3] }
 0x1c5   : > { %v945_v36 = vadd.f32 %v944_v7, %v896_v11  ;;  %v2189_v11 = vld [vmem:[#allocation5 + $0x20] sm:$0xff] }
 0x1c6   : > { %v980_v25 = vmax.f32 %v850_v62, 0.0  ;;  %v2186_v62 = vld [vmem:[#allocation5 + $0x8] sm:$0xff] }
 0x1c7   : > { %v979_v6 = vmax.f32 %v945_v36, 0.0  ;;  %1581 = vmatpush.bf16.msra.mxu3 %v2189_v11  ;;  %v899_v36 = vadd.f32 %v898_v63, %v3114_v35 }
 0x1c9   : > { %v997_v0 = vpack.c.bf16 %v979_v6, %v977_v46  ;;  %v802_v28 = vpop.f32.mrf.mxu2  ;;  %v2187_v46 = vld [vmem:[#allocation5 + $0x10] sm:$0xff] }
 0x1ca   : > { %v803_v3 = vadd.f32 %v802_v28, %v3110_v50  ;;  %v851_v40 = vpop.f32.mrf.mxu3  ;;  %v2188_v50 = vld [vmem:[#allocation5 + $0x18] sm:$0xff] }
 0x1cb   : > { %2081 = vmatmul.msk.bf16.gmra.mxu2 %vm448_vm0, %v997_v0  ;;  %2089 = vmatmul.msk.bf16.gmra.mxu1 %vm448_vm0, %v997_v0 }
 0x1cc   : > { %v852_v45 = vadd.f32 %v851_v40, %v803_v3  ;;  %v947_v8 = vpop.f32.mrf.mxu1  ;;  %1582 = vmatpush.bf16.msra.mxu3 %v2188_v50  ;;  %v2185_v3 = vld [vmem:[#allocation5] sm:$0xff] }
 0x1cd   : > { %v948_v54 = vadd.f32 %v947_v8, %v899_v36  ;;  %v387_v8 = vld [vmem:[#allocation7 + $0x2] ss:$8 sm:$0x3] }
 0x1ce   : > { %v982_v19 = vmax.f32 %v852_v45, 0.0 }
 0x1cf   : > { %v981_v6 = vmax.f32 %v948_v54, 0.0 }
 0x1d0   : > { %v998_v7 = vpack.c.bf16 %v982_v19, %v980_v25  ;;  %1583 = vmatpush.bf16.msra.mxu3 %v2187_v46  ;;  %v3164_v19 = vperm.slane %v387_v8, 1 }
 0x1d2   : > { %1175 = vmatmul.bf16.gmra.mxu3 %v998_v7  ;;  %1273 = vmatmul.bf16.gmra.mxu0 %v998_v7 }
 0x1d4   : > { %v949_v59 = vpop.f32.mrf.mxu1  ;;  %1584 = vmatpush.bf16.msra.mxu3 %v2186_v62 }
 0x1d5   : > { %v950_v57 = vadd.f32 %v949_v59, %v901_v56  ;;  %v3167_v59 = vperm.slane %v389_v53, 1 }
 0x1d7   : > { %v983_v0 = vmax.f32 %v950_v57, 0.0 }
 0x1d8   : > { %1585 = vmatpush.bf16.msra.mxu3 %v2185_v3  ;;  %v3178_v3 = vperm.slane %v389_v53, 0 }
 0x1d9   : > { %v999_v28 = vpack.c.bf16 %v983_v0, %v981_v6  ;;  %v3171_v6 = vperm.slane %v387_v8, 0 }
 0x1db   : > { %2082 = vmatmul.msk.bf16.gmra.mxu2 %vm448_vm0, %v999_v28  ;;  %2090 = vmatmul.msk.bf16.gmra.mxu1 %vm448_vm0, %v999_v28 }
 0x1de   : > { %v1239_v63 = vpop.f32.mrf.mxu0 }
 0x1e4   : > { %v1141_v60 = vpop.f32.mrf.mxu3 }
 0x1e6   : > { %v1241_v35 = vpop.f32.mrf.mxu0 }
 0x1e8   : > { %v1288_v40 = vpop.f32.mrf.mxu1 }
 0x1e9   : > { %v1289_v45 = vadd.f32 %v1288_v40, %v1239_v63 }
 0x1eb   : > { %v1329_v25 = vadd.f32 %v1289_v45, %v572_v14 }
 0x1ec   : > { %v1143_v11 = vpop.f32.mrf.mxu3 }
 0x1ed   : > { %v1366_v54 = vmul.f32 %v3164_v19, %v1329_v25 }
 0x1ee   : > { %v1190_v7 = vpop.f32.mrf.mxu2 }
 0x1ef   : > { %v1191_v36 = vadd.f32 %v1190_v7, %v1141_v60  ;;  %v1244_v50 = vpop.f32.mrf.mxu0  ;;  %v1403_v14 = vadd.f32 %v3167_v59, %v1366_v54 }
 0x1f0   : > { %v1290_v56 = vpop.f32.mrf.mxu1 }
 0x1f1   : > { %v1291_v57 = vadd.f32 %v1290_v56, %v1241_v35  ;;  %v1328_v46 = vadd.f32 %v1191_v36, %v571_v16  ;;  %v1435_v40 = vmax.f32 %v1403_v14, 0.0 }
 0x1f3   : > { %v1331_v9 = vadd.f32 %v1291_v57, %v574_v18  ;;  %v1365_v63 = vmul.f32 %v3171_v6, %v1328_v46 }
 0x1f5   : > { %v1368_v0 = vmul.f32 %v3164_v19, %v1331_v9  ;;  %v1146_v28 = vpop.f32.mrf.mxu3  ;;  %v1402_v8 = vadd.f32 %v3178_v3, %v1365_v63 }
 0x1f6   : > { %v1192_v62 = vpop.f32.mrf.mxu2 }
 0x1f7   : > { %v1405_v60 = vadd.f32 %v3167_v59, %v1368_v0  ;;  %v1193_v35 = vadd.f32 %v1192_v62, %v1143_v11  ;;  %v1246_v10 = vpop.f32.mrf.mxu0  ;;  %v1434_v54 = vmax.f32 %v1402_v8, 0.0 }
 0x1f8   : > { %v1293_v16 = vpop.f32.mrf.mxu1 }
 0x1f9   : > { %v1437_v45 = vmax.f32 %v1405_v60, 0.0  ;;  %v1330_v15 = vadd.f32 %v1193_v35, %v573_v17  ;;  %v1294_v18 = vadd.f32 %v1293_v16, %v1244_v50 }
 0x1fb   : > { %v1467_v25 = vpack.c.bf16 %v1437_v45, %v1435_v40  ;;  %v1367_v7 = vmul.f32 %v3171_v6, %v1330_v15  ;;  %v1333_v53 = vadd.f32 %v1294_v18, %v576_v29 }
 0x1fd   : > { %v1404_v36 = vadd.f32 %v3178_v3, %v1367_v7  ;;  %2127 = vmatmul.msk.bf16.vlgmr.msra.gmra.mxu2 %vm448_vm0, %v1467_v25  ;;  %v1148_v11 = vpop.f32.mrf.mxu3  ;;  %v1370_v9 = vmul.f32 %v3164_v19, %v1333_v53 }
 0x1fe   : > { %v1195_v56 = vpop.f32.mrf.mxu2 }
 0x1ff   : > { %v1436_v57 = vmax.f32 %v1404_v36, 0.0  ;;  %v1196_v46 = vadd.f32 %v1195_v56, %v1146_v28  ;;  %v1249_v12 = vpop.f32.mrf.mxu0  ;;  %v1407_v29 = vadd.f32 %v3167_v59, %v1370_v9 }
 0x200   : > { %v1295_v17 = vpop.f32.mrf.mxu1 }
 0x201   : > { %v1466_v50 = vpack.c.bf16 %v1436_v57, %v1434_v54  ;;  %v1296_v14 = vadd.f32 %v1295_v17, %v1246_v10  ;;  %v1332_v0 = vadd.f32 %v1196_v46, %v575_v26  ;;  %v1439_v45 = vmax.f32 %v1407_v29, 0.0 }
 0x203   : > { %v1335_v24 = vadd.f32 %v1296_v14, %v578_v32  ;;  %1586 = vmatmul.bf16.vlgmr.msra.gmra.mxu3 %v1466_v50  ;;  %v1369_v28 = vmul.f32 %v3171_v6, %v1332_v0 }
 0x205   : > { %v1372_v62 = vmul.f32 %v3164_v19, %v1335_v24  ;;  %v1151_v63 = vpop.f32.mrf.mxu3  ;;  %v1406_v18 = vadd.f32 %v3178_v3, %v1369_v28 }
 0x206   : > { %v1197_v60 = vpop.f32.mrf.mxu2 }
 0x207   : > { %v1409_v35 = vadd.f32 %v3167_v59, %v1372_v62  ;;  %v1198_v16 = vadd.f32 %v1197_v60, %v1148_v11  ;;  %v1251_v40 = vpop.f32.mrf.mxu0  ;;  %v1438_v56 = vmax.f32 %v1406_v18, 0.0 }
 0x208   : > { %v1298_v10 = vpop.f32.mrf.mxu1 }
 0x209   : > { %v1441_v23 = vmax.f32 %v1409_v35, 0.0  ;;  %v1334_v26 = vadd.f32 %v1198_v16, %v577_v31  ;;  %v1299_v30 = vadd.f32 %v1298_v10, %v1249_v12  ;;  %v3413_v12 = vmax.f32 %v2846_v37, 0.0 }
 0x20a   : > { %v3415_v35 = vmax.f32 %v2853_v41, 0.0 }
 0x20b   : > { %v1371_v32 = vmul.f32 %v3171_v6, %v1334_v26  ;;  %v1469_v15 = vpack.c.bf16 %v1441_v23, %v1439_v45  ;;  %v1337_v8 = vadd.f32 %v1299_v30, %v580_v43  ;;  %v3416_v23 = vmax.f32 %v2875_v52, 0.0 }
 0x20c   : > { %v3418_v52 = vmax.f32 %v2883_v58, 0.0 }
 0x20d   : > { %2128 = vmatmul.msk.bf16.gmra.mxu2 %vm448_vm0, %v1469_v15  ;;  %v1153_v25 = vpop.f32.mrf.mxu3  ;;  %v1408_v7 = vadd.f32 %v3178_v3, %v1371_v32  ;;  %v1374_v54 = vmul.f32 %v3164_v19, %v1337_v8 }
 0x20e   : > { %v1200_v36 = vpop.f32.mrf.mxu2 }
 0x20f   : > { %v1201_v53 = vadd.f32 %v1200_v36, %v1151_v63  ;;  %v1254_v11 = vpop.f32.mrf.mxu0  ;;  %v1440_v27 = vmax.f32 %v1408_v7, 0.0  ;;  %v1411_v50 = vadd.f32 %v3167_v59, %v1374_v54 }
 0x210   : > { %v1300_v31 = vpop.f32.mrf.mxu1 }
 0x211   : > { %v1301_v57 = vadd.f32 %v1300_v31, %v1251_v40  ;;  %v1468_v46 = vpack.c.bf16 %v1440_v27, %v1438_v56  ;;  %v1336_v17 = vadd.f32 %v1201_v53, %v3413_v12  ;;  %v1443_v28 = vmax.f32 %v1411_v50, 0.0 }
 0x212   : > { %v3417_v56 = vmax.f32 %v2872_v51, 0.0 }
 0x213   : > { %v1339_v43 = vadd.f32 %v1301_v57, %v3414_v38  ;;  %1591 = vmatmul.bf16.gmra.mxu3 %v1468_v46  ;;  %v1373_v24 = vmul.f32 %v3171_v6, %v1336_v17 }
 0x215   : > { %v1376_v9 = vmul.f32 %v3164_v19, %v1339_v43  ;;  %v1156_v14 = vpop.f32.mrf.mxu3  ;;  %v1410_v45 = vadd.f32 %v3178_v3, %v1373_v24 }
 0x216   : > { %v1202_v0 = vpop.f32.mrf.mxu2 }
 0x217   : > { %v1413_v29 = vadd.f32 %v3167_v59, %v1376_v9  ;;  %v1203_v62 = vadd.f32 %v1202_v0, %v1153_v25  ;;  %v1256_v63 = vpop.f32.mrf.mxu0  ;;  %v1442_v25 = vmax.f32 %v1410_v45, 0.0  ;;  %v3419_v0 = vmax.f32 %v2879_v55, 0.0 }
 0x218   : > { %v1303_v60 = vpop.f32.mrf.mxu1 }
 0x219   : > { %v1445_v37 = vmax.f32 %v1413_v29, 0.0  ;;  %v1338_v44 = vadd.f32 %v1203_v62, %v3415_v35  ;;  %v1304_v16 = vadd.f32 %v1303_v60, %v1254_v11  ;;  %v3420_v60 = vmax.f32 %v2901_v2, 0.0 }
 0x21a   : > { %v3422_v2 = vmax.f32 %v2909_v13, 0.0 }
 0x21b   : > { %v1375_v40 = vmul.f32 %v3171_v6, %v1338_v44  ;;  %v1471_v10 = vpack.c.bf16 %v1445_v37, %v1443_v28  ;;  %v1341_v26 = vadd.f32 %v1304_v16, %v3416_v23 }
 0x21d   : > { %2129 = vmatmul.msk.bf16.gmra.mxu2 %vm448_vm0, %v1471_v10  ;;  %v1158_v30 = vpop.f32.mrf.mxu3  ;;  %v1412_v32 = vadd.f32 %v3178_v3, %v1375_v40  ;;  %v1378_v36 = vmul.f32 %v3164_v19, %v1341_v26 }
 0x21e   : > { %v1205_v15 = vpop.f32.mrf.mxu2 }
 0x21f   : > { %v1206_v18 = vadd.f32 %v1205_v15, %v1156_v14  ;;  %v1259_v8 = vpop.f32.mrf.mxu0  ;;  %v1444_v41 = vmax.f32 %v1412_v32, 0.0  ;;  %v1415_v54 = vadd.f32 %v3167_v59, %v1378_v36  ;;  %v3421_v32 = vmax.f32 %v2898_v1, 0.0 }
 0x220   : > { %v1305_v7 = vpop.f32.mrf.mxu1 }
 0x221   : > { %v1306_v53 = vadd.f32 %v1305_v7, %v1256_v63  ;;  %v1470_v11 = vpack.c.bf16 %v1444_v41, %v1442_v25  ;;  %v1340_v27 = vadd.f32 %v1206_v18, %v3417_v56  ;;  %v1447_v14 = vmax.f32 %v1415_v54, 0.0 }
 0x223   : > { %v1343_v31 = vadd.f32 %v1306_v53, %v3418_v52  ;;  %1596 = vmatmul.bf16.gmra.mxu3 %v1470_v11  ;;  %v1377_v17 = vmul.f32 %v3171_v6, %v1340_v27 }
 0x225   : > { %v1380_v57 = vmul.f32 %v3164_v19, %v1343_v31  ;;  %v1161_v46 = vpop.f32.mrf.mxu3  ;;  %v1414_v63 = vadd.f32 %v3178_v3, %v1377_v17  ;;  %v3423_v31 = vmax.f32 %v2905_v5, 0.0  ;;  %v3424_v17 = vmax.f32 %v2927_v34, 0.0 }
 0x226   : > { %v1207_v12 = vpop.f32.mrf.mxu2  ;;  %v3426_v34 = vmax.f32 %v2935_v48, 0.0 }
 0x227   : > { %v1417_v38 = vadd.f32 %v3167_v59, %v1380_v57  ;;  %v1208_v43 = vadd.f32 %v1207_v12, %v1158_v30  ;;  %v1261_v50 = vpop.f32.mrf.mxu0  ;;  %v1446_v10 = vmax.f32 %v1414_v63, 0.0  ;;  %v3425_v63 = vmax.f32 %v2924_v33, 0.0 }
 0x228   : > { %v1308_v9 = vpop.f32.mrf.mxu1  ;;  %v3427_v33 = vmax.f32 %v2931_v39, 0.0 }
 0x229   : > { %v1449_v51 = vmax.f32 %v1417_v38, 0.0  ;;  %v1342_v58 = vadd.f32 %v1208_v43, %v3419_v0  ;;  %v1309_v24 = vadd.f32 %v1308_v9, %v1259_v8 }
 0x22b   : > { %v1379_v29 = vmul.f32 %v3171_v6, %v1342_v58  ;;  %v1473_v62 = vpack.c.bf16 %v1449_v51, %v1447_v14  ;;  %v1345_v28 = vadd.f32 %v1309_v24, %v3420_v60 }
 0x22d   : > { %2130 = vmatmul.msk.bf16.gmra.mxu2 %vm448_vm0, %v1473_v62  ;;  %v1163_v37 = vpop.f32.mrf.mxu3  ;;  %v1416_v35 = vadd.f32 %v3178_v3, %v1379_v29  ;;  %v1382_v23 = vmul.f32 %v3164_v19, %v1345_v28 }
 0x22e   : > { %v1210_v44 = vpop.f32.mrf.mxu2 }
 0x22f   : > { %v1211_v16 = vadd.f32 %v1210_v44, %v1161_v46  ;;  %v1264_v40 = vpop.f32.mrf.mxu0  ;;  %v1448_v55 = vmax.f32 %v1416_v35, 0.0  ;;  %v1419_v8 = vadd.f32 %v3167_v59, %v1382_v23 }
 0x230   : > { %v1310_v45 = vpop.f32.mrf.mxu1 }
 0x231   : > { %v1311_v26 = vadd.f32 %v1310_v45, %v1261_v50  ;;  %v1472_v30 = vpack.c.bf16 %v1448_v55, %v1446_v10  ;;  %v1344_v15 = vadd.f32 %v1211_v16, %v3421_v32  ;;  %v1451_v52 = vmax.f32 %v1419_v8, 0.0 }
 0x232   : > { %v3428_v8 = vmax.f32 %v2989_v22, 0.0  ;;  %v3430_v22 = vmax.f32 %v2997_v47, 0.0 }
 0x233   : > { %v1347_v18 = vadd.f32 %v1311_v26, %v3422_v2  ;;  %1601 = vmatmul.bf16.gmra.mxu3 %v1472_v30  ;;  %v1381_v36 = vmul.f32 %v3171_v6, %v1344_v15 }
 0x235   : > { %v1384_v25 = vmul.f32 %v3164_v19, %v1347_v18  ;;  %v1166_v41 = vpop.f32.mrf.mxu3  ;;  %v1418_v12 = vadd.f32 %v3178_v3, %v1381_v36 }
 0x236   : > { %v1212_v7 = vpop.f32.mrf.mxu2 }
 0x237   : > { %v1421_v53 = vadd.f32 %v3167_v59, %v1384_v25  ;;  %v1213_v11 = vadd.f32 %v1212_v7, %v1163_v37  ;;  %v1266_v56 = vpop.f32.mrf.mxu0  ;;  %v1450_v51 = vmax.f32 %v1418_v12, 0.0 }
 0x238   : > { %v1313_v27 = vpop.f32.mrf.mxu1 }
 0x239   : > { %v1453_v1 = vmax.f32 %v1421_v53, 0.0  ;;  %v1346_v13 = vadd.f32 %v1213_v11, %v3423_v31  ;;  %v1314_v54 = vadd.f32 %v1313_v27, %v1264_v40  ;;  %v3429_v31 = vmax.f32 %v2980_v21, 0.0 }
 0x23a   : > { %v3431_v21 = vmax.f32 %v2993_v61, 0.0 }
 0x23b   : > { %v1383_v57 = vmul.f32 %v3171_v6, %v1346_v13  ;;  %v1475_v46 = vpack.c.bf16 %v1453_v1, %v1451_v52  ;;  %v1349_v38 = vadd.f32 %v1314_v54, %v3424_v17 }
 0x23d   : > { %2131 = vmatmul.msk.bf16.gmra.mxu2 %vm448_vm0, %v1475_v46  ;;  %v1420_v43 = vadd.f32 %v3178_v3, %v1383_v57  ;;  %v1168_v50 = vpop.f32.mrf.mxu3  ;;  %v1386_v58 = vmul.f32 %v3164_v19, %v1349_v38 }
 0x23e   : > { %v1215_v9 = vpop.f32.mrf.mxu2 }
 0x23f   : > { %v1216_v14 = vadd.f32 %v1215_v9, %v1166_v41  ;;  %v1452_v0 = vmax.f32 %v1420_v43, 0.0  ;;  %v1269_v62 = vpop.f32.mrf.mxu0  ;;  %v1423_v37 = vadd.f32 %v3167_v59, %v1386_v58 }
 0x240   : > { %v1315_v5 = vpop.f32.mrf.mxu1 }
 0x241   : > { %v1316_v24 = vadd.f32 %v1315_v5, %v1266_v56  ;;  %v1474_v29 = vpack.c.bf16 %v1452_v0, %v1450_v51  ;;  %v1348_v60 = vadd.f32 %v1216_v14, %v3425_v63  ;;  %v1455_v23 = vmax.f32 %v1423_v37, 0.0 }
 0x243   : > { %v1351_v28 = vadd.f32 %v1316_v24, %v3426_v34  ;;  %1606 = vmatmul.bf16.gmra.mxu3 %v1474_v29  ;;  %v1385_v16 = vmul.f32 %v3171_v6, %v1348_v60 }
 0x245   : > { %v1388_v35 = vmul.f32 %v3164_v19, %v1351_v28  ;;  %v1171_v55 = vpop.f32.mrf.mxu3  ;;  %v1422_v2 = vadd.f32 %v3178_v3, %v1385_v16 }
 0x246   : > { %v1217_v44 = vpop.f32.mrf.mxu2 }
 0x247   : > { %v1425_v40 = vadd.f32 %v3167_v59, %v1388_v35  ;;  %v1218_v10 = vadd.f32 %v1217_v44, %v1168_v50  ;;  %v1271_v18 = vpop.f32.mrf.mxu0  ;;  %v1454_v53 = vmax.f32 %v1422_v2, 0.0 }
 0x248   : > { %v1318_v45 = vpop.f32.mrf.mxu1 }
 0x249   : > { %v1457_v26 = vmax.f32 %v1425_v40, 0.0  ;;  %v1350_v30 = vadd.f32 %v1218_v10, %v3427_v33  ;;  %v1319_v48 = vadd.f32 %v1318_v45, %v1269_v62  ;;  %v3432_v62 = vmax.f32 %v3051_v49, 0.0 }
 0x24a   : > { %v3434_v49 = vmax.f32 %v3077_v4, 0.0 }
 0x24b   : > { %v1387_v32 = vmul.f32 %v3171_v6, %v1350_v30  ;;  %v1477_v15 = vpack.c.bf16 %v1457_v26, %v1455_v23  ;;  %v1353_v25 = vadd.f32 %v1319_v48, %v3428_v8 }
 0x24d   : > { %2132 = vmatmul.msk.bf16.gmra.mxu2 %vm448_vm0, %v1477_v15  ;;  %v1424_v41 = vadd.f32 %v3178_v3, %v1387_v32  ;;  %v1390_v56 = vmul.f32 %v3164_v19, %v1353_v25  ;;  %v1173_v1 = vpop.f32.mrf.mxu3 }
 0x24e   : > { %v1220_v7 = vpop.f32.mrf.mxu2 }
 0x24f   : > { %v1221_v36 = vadd.f32 %v1220_v7, %v1171_v55  ;;  %v1456_v11 = vmax.f32 %v1424_v41, 0.0  ;;  %v1427_v57 = vadd.f32 %v3167_v59, %v1390_v56  ;;  %v1274_v12 = vpop.f32.mrf.mxu0  ;;  %v3433_v55 = vmax.f32 %v3042_v42, 0.0 }
 0x250   : > { %v1320_v39 = vpop.f32.mrf.mxu1  ;;  %v3435_v42 = vmax.f32 %v3070_v20, 0.0 }
 0x251   : > { %v1321_v27 = vadd.f32 %v1320_v39, %v1271_v18  ;;  %v1476_v52 = vpack.c.bf16 %v1456_v11, %v1454_v53  ;;  %v1352_v13 = vadd.f32 %v1221_v36, %v3429_v31  ;;  %v1459_v14 = vmax.f32 %v1427_v57, 0.0  ;;  %v3306_v39 = vld [vmem:[#allocation7 + $0x4] ss:$0 sm:$0xff] }
 0x253   : > { %v1355_v54 = vadd.f32 %v1321_v27, %v3430_v22  ;;  %1611 = vmatmul.bf16.gmra.mxu3 %v1476_v52  ;;  %v1389_v38 = vmul.f32 %v3171_v6, %v1352_v13 }
 0x255   : > { %v1392_v46 = vmul.f32 %v3164_v19, %v1355_v54  ;;  %v1426_v24 = vadd.f32 %v3178_v3, %v1389_v38  ;;  %v1176_v29 = vpop.f32.mrf.mxu3 }
 0x256   : > { %v1222_v17 = vpop.f32.mrf.mxu2 }
 0x257   : > { %v1429_v43 = vadd.f32 %v3167_v59, %v1392_v46  ;;  %v1223_v50 = vadd.f32 %v1222_v17, %v1173_v1  ;;  %v1458_v37 = vmax.f32 %v1426_v24, 0.0  ;;  %v1276_v61 = vpop.f32.mrf.mxu0 }
 0x258   : > { %v1323_v9 = vpop.f32.mrf.mxu1 }
 0x259   : > { %v1461_v51 = vmax.f32 %v1429_v43, 0.0  ;;  %v1354_v0 = vadd.f32 %v1223_v50, %v3431_v21  ;;  %v1324_v47 = vadd.f32 %v1323_v9, %v1274_v12 }
 0x25b   : > { %v1391_v5 = vmul.f32 %v3171_v6, %v1354_v0  ;;  %v1479_v58 = vpack.c.bf16 %v1461_v51, %v1459_v14  ;;  %v1357_v63 = vadd.f32 %v1324_v47, %v3432_v62 }
 0x25d   : > { %2133 = vmatmul.msk.bf16.gmra.mxu2 %vm448_vm0, %v1479_v58  ;;  %v1428_v60 = vadd.f32 %v3178_v3, %v1391_v5  ;;  %v1394_v16 = vmul.f32 %v3164_v19, %v1357_v63  ;;  %v1178_v30 = vpop.f32.mrf.mxu3 }
 0x25e   : > { %v1225_v34 = vpop.f32.mrf.mxu2 }
 0x25f   : > { %v1226_v28 = vadd.f32 %v1225_v34, %v1176_v29  ;;  %v1460_v35 = vmax.f32 %v1428_v60, 0.0  ;;  %v1431_v26 = vadd.f32 %v3167_v59, %v1394_v16 }
 0x260   : > { %v1325_v44 = vpop.f32.mrf.mxu1 }
 0x261   : > { %v1326_v40 = vadd.f32 %v1325_v44, %v1276_v61  ;;  %v1478_v10 = vpack.c.bf16 %v1460_v35, %v1458_v37  ;;  %v1356_v45 = vadd.f32 %v1226_v28, %v3433_v55  ;;  %v1463_v18 = vmax.f32 %v1431_v26, 0.0 }
 0x263   : > { %v1359_v23 = vadd.f32 %v1326_v40, %v3434_v49  ;;  %1616 = vmatmul.bf16.gmra.mxu3 %v1478_v10  ;;  %v1393_v32 = vmul.f32 %v3171_v6, %v1356_v45 }
 0x265   : > { %v1396_v33 = vmul.f32 %v3164_v19, %v1359_v23  ;;  %v1430_v7 = vadd.f32 %v3178_v3, %v1393_v32 }
 0x266   : > { %v1227_v48 = vpop.f32.mrf.mxu2 }
 0x267   : > { %v1433_v15 = vadd.f32 %v3167_v59, %v1396_v33  ;;  %v1228_v2 = vadd.f32 %v1227_v48, %v1178_v30  ;;  %v1462_v36 = vmax.f32 %v1430_v7, 0.0 }
 0x269   : > { %v1465_v8 = vmax.f32 %v1433_v15, 0.0  ;;  %v1358_v25 = vadd.f32 %v1228_v2, %v3435_v42 }
 0x26b   : > { %v1395_v4 = vmul.f32 %v3171_v6, %v1358_v25  ;;  %v1481_v41 = vpack.c.bf16 %v1465_v8, %v1463_v18 }
 0x26d   : > { %2134 = vmatmul.msk.bf16.gmra.mxu2 %vm448_vm0, %v1481_v41  ;;  %v1432_v19 = vadd.f32 %v3178_v3, %v1395_v4 }
 0x26f   : > { %v1464_v53 = vmax.f32 %v1432_v19, 0.0 }
 0x271   : > { %v1480_v11 = vpack.c.bf16 %v1464_v53, %v1462_v36 }
 0x273   : > { %1621 = vmatmul.bf16.gmra.mxu3 %v1480_v11 }
 0x280   : > { %v1636_v59 = vpop.f32.mrf.mxu2 }
 0x286   : > { %v1587_v56 = vpop.f32.mrf.mxu3 }
 0x287   : > { %v1588_v20 = vadd.f32 %v1587_v56, %v3306_v39 }
 0x288   : > { %v1638_v27 = vpop.f32.mrf.mxu2 }
 0x289   : > { %v3309_v52 = vadd.f32 %v1636_v59, %v1588_v20 }
 0x28e   : > { %v1589_v6 = vpop.f32.mrf.mxu3 }
 0x28f   : > { %v1590_v1 = vadd.f32 %v1589_v6, %v3306_v39 }
 0x290   : > { %v1641_v31 = vpop.f32.mrf.mxu2 }
 0x291   : > { %v3312_v13 = vadd.f32 %v1638_v27, %v1590_v1 }
 0x296   : > { %v1592_v3 = vpop.f32.mrf.mxu3 }
 0x297   : > { %v1593_v22 = vadd.f32 %v1592_v3, %v3306_v39 }
 0x298   : > { %v1643_v54 = vpop.f32.mrf.mxu2 }
 0x299   : > { %v3315_v57 = vadd.f32 %v1641_v31, %v1593_v22 }
 0x29e   : > { %v1594_v46 = vpop.f32.mrf.mxu3 }
 0x29f   : > { %v1595_v12 = vadd.f32 %v1594_v46, %v3306_v39 }
 0x2a0   : > { %v1646_v17 = vpop.f32.mrf.mxu2 }
 0x2a1   : > { %v3318_v38 = vadd.f32 %v1643_v54, %v1595_v12 }
 0x2a6   : > { %v1597_v43 = vpop.f32.mrf.mxu3 }
 0x2a7   : > { %v1598_v50 = vadd.f32 %v1597_v43, %v3306_v39  ;;  %v1678_v43 = vmax.f32 %v3315_v57, 0.0 }
 0x2a8   : > { %v1648_v9 = vpop.f32.mrf.mxu2 }
 0x2a9   : > { %v3321_v14 = vadd.f32 %v1646_v17, %v1598_v50  ;;  %v1679_v17 = vmax.f32 %v3318_v38, 0.0  ;;  %v1677_v50 = vmax.f32 %v3312_v13, 0.0 }
 0x2ab   : > { %v1680_v12 = vmax.f32 %v3321_v14, 0.0 }
 0x2ae   : > { %v1599_v51 = vpop.f32.mrf.mxu3 }
 0x2af   : > { %v1600_v21 = vadd.f32 %v1599_v51, %v3306_v39  ;;  %v1692_v51 = vld [vmem:[%s2646_s28] sm:$0xff]  ;;  %s2419_s28 = scalar_lea.hbm %s2418_s21, 8 }
 0x2b0   : > { %v1651_v0 = vpop.f32.mrf.mxu2  ;;  %p2420_p3 = scmp.ne.s32.totalorder %s2418_s21, %s2419_s28  ;;  %p2425_p7 = scmp.lt.s32.totalorder %s2423_s22, %s2419_s28 }
 0x2b1   : > { %v1649_v47 = vadd.f32 %v1648_v9, %v1600_v21  ;;  %v1676_v9 = vmax.f32 %v3309_v52, 0.0 }
 0x2b2   : > { %p2421_p11 = pnand %p2420_p3, %p2601_p12  ;;  %p2426_p8 = por %p2425_p7, %p2424_p6 }
 0x2b4   : > { %p2422_p5 = pneg %p2421_p11 }
 0x2b6   : > { %v1602_v5 = vpop.f32.mrf.mxu3  ;;  %p2427_p9 = pnand %p2426_p8, %p2422_p5 }
 0x2b7   : > { %v1603_v58 = vadd.f32 %v1602_v5, %v3306_v39 }
 0x2b8   : > { %v1653_v24 = vpop.f32.mrf.mxu2 }
 0x2b9   : > { %v1652_v29 = vadd.f32 %v1651_v0, %v1603_v58 }
 0x2bb   : > { %v1682_v46 = vmax.f32 %v1652_v29, 0.0 }
 0x2be   : > { %v1604_v62 = vpop.f32.mrf.mxu3 }
 0x2bf   : > { %v1605_v63 = vadd.f32 %v1604_v62, %v3306_v39 }
 0x2c0   : > { %v1656_v60 = vpop.f32.mrf.mxu2 }
 0x2c1   : > { %v1654_v34 = vadd.f32 %v1653_v24, %v1605_v63 }
 0x2c3   : > { %v1683_v54 = vmax.f32 %v1654_v34, 0.0 }
 0x2c6   : > { %v1607_v28 = vpop.f32.mrf.mxu3 }
 0x2c7   : > { %v1608_v37 = vadd.f32 %v1607_v28, %v3306_v39 }
 0x2c8   : > { %v1658_v35 = vpop.f32.mrf.mxu2 }
 0x2c9   : > { %v1657_v61 = vadd.f32 %v1656_v60, %v1608_v37 }
 0x2cb   : > { %v1684_v22 = vmax.f32 %v1657_v61, 0.0 }
 0x2ce   : > { %v1609_v44 = vpop.f32.mrf.mxu3 }
 0x2cf   : > { %v1610_v11 = vadd.f32 %v1609_v44, %v3306_v39 }
 0x2d0   : > { %v1661_v16 = vpop.f32.mrf.mxu2 }
 0x2d1   : > { %v1659_v6 = vadd.f32 %v1658_v35, %v1610_v11 }
 0x2d3   : > { %v1685_v3 = vmax.f32 %v1659_v6, 0.0 }
 0x2d6   : > { %v1612_v40 = vpop.f32.mrf.mxu3 }
 0x2d7   : > { %v1613_v19 = vadd.f32 %v1612_v40, %v3306_v39 }
 0x2d8   : > { %v1663_v10 = vpop.f32.mrf.mxu2 }
 0x2d9   : > { %v1662_v20 = vadd.f32 %v1661_v16, %v1613_v19 }
 0x2db   : > { %v1686_v31 = vmax.f32 %v1662_v20, 0.0 }
 0x2de   : > { %v1614_v55 = vpop.f32.mrf.mxu3 }
 0x2df   : > { %v1615_v4 = vadd.f32 %v1614_v55, %v3306_v39 }
 0x2e0   : > { %v1666_v45 = vpop.f32.mrf.mxu2 }
 0x2e1   : > { %v1664_v59 = vadd.f32 %v1663_v10, %v1615_v4 }
 0x2e3   : > { %v1687_v1 = vmax.f32 %v1664_v59, 0.0 }
 0x2e6   : > { %v1617_v49 = vpop.f32.mrf.mxu3 }
 0x2e7   : > { %v1618_v8 = vadd.f32 %v1617_v49, %v3306_v39 }
 0x2e8   : > { %v1668_v23 = vpop.f32.mrf.mxu2 }
 0x2e9   : > { %v1667_v36 = vadd.f32 %v1666_v45, %v1618_v8 }
 0x2eb   : > { %v1688_v27 = vmax.f32 %v1667_v36, 0.0 }
 0x2ee   : > { %v1619_v26 = vpop.f32.mrf.mxu3 }
 0x2ef   : > { %v1620_v15 = vadd.f32 %v1619_v26, %v3306_v39 }
 0x2f0   : > { %v1671_v33 = vpop.f32.mrf.mxu2 }
 0x2f1   : > { %v1669_v41 = vadd.f32 %v1668_v23, %v1620_v15 }
 0x2f3   : > { %v1689_v56 = vmax.f32 %v1669_v41, 0.0 }
 0x2f6   : > { %v1622_v30 = vpop.f32.mrf.mxu3 }
 0x2f7   : > { %v1623_v48 = vadd.f32 %v1622_v30, %v3306_v39 }
 0x2f8   : > { %v1673_v18 = vpop.f32.mrf.mxu2 }
 0x2f9   : > { %v1672_v42 = vadd.f32 %v1671_v33, %v1623_v48 }
 0x2fb   : > { %v1690_v53 = vmax.f32 %v1672_v42, 0.0 }
 0x2fe   : > { %v1624_v32 = vpop.f32.mrf.mxu3 }
 0x2ff   : > { %v1625_v2 = vadd.f32 %v1624_v32, %v3306_v39  ;;  %v1681_v39 = vmax.f32 %v1649_v47, 0.0 }
 0x301   : > { %v1674_v25 = vadd.f32 %v1673_v18, %v1625_v2 }
 0x303   : > { %v1691_v7 = vmax.f32 %v1674_v25, 0.0 }
 0x305   : > { %1693 = vmatpush.msrb.mxu0 %v1691_v7 }
 0x307   : > { %1694 = vmatpush.msrb.mxu0 %v1690_v53 }
 0x309   : > { %1695 = vmatpush.msrb.mxu0 %v1689_v56 }
 0x30b   : > { %1696 = vmatpush.msrb.mxu0 %v1688_v27 }
 0x30d   : > { %1697 = vmatpush.msrb.mxu0 %v1687_v1 }
 0x30f   : > { %1698 = vmatpush.msrb.mxu0 %v1686_v31 }
 0x311   : > { %1699 = vmatpush.msrb.mxu0 %v1685_v3 }
 0x313   : > { %1700 = vmatpush.msrb.mxu0 %v1684_v22 }
 0x315   : > { %1701 = vmatpush.msrb.mxu0 %v1683_v54 }
 0x317   : > { %1702 = vmatpush.msrb.mxu0 %v1682_v46 }
 0x319   : > { %1703 = vmatpush.msrb.mxu0 %v1681_v39 }
 0x31b   : > { %1704 = vmatpush.msrb.mxu0 %v1680_v12 }
 0x31d   : > { %1705 = vmatpush.msrb.mxu0 %v1679_v17 }
 0x31f   : > { %1706 = vmatpush.msrb.mxu0 %v1678_v43 }
 0x321   : > { %1707 = vmatpush.msrb.mxu0 %v1677_v50 }
 0x323   : > { %1708 = vmatpush.msrb.mxu0 %v1676_v9 }
 0x324   : > { %1709 = vmatmul.f32.vlgmr.msrb.gmra.mxu0 %v1692_v51 }
 0x3a1   : > { %v1710_v13 = vpop.f32.mrf.mxu0 }
 0x3a2   : > { %1713 = vst [vmem:[%s359_s30] sm:$0xff] %v1710_v13 }
 0x3a3   : > { %2430 = shalt.err (!%p2427_p9)
}
 0x3a4   : > { %2216 = dma.vmem_to_hbm [thread:$0]  (%p2601_p12), %s1728_s12, 128, %s1730_s15, %s1715_s20  }
 0x3a5 PF: > { %p2243_p10 = scmp.ge.s32.totalorder %s2477_s27, 2  ;;  %s1741_s1 = sand.u32 1, %s2465_s24  }
 0x3a6   : > { %s1742_s13 = scalar_lea.sflag [#allocation4], %s1741_s1 }
 0x3a7   : > { %p2233_p13 = pnand %p2243_p10, %p2606_p2 }
 0x3a9   : > { %p2234_p0 = pneg %p2233_p13 }
 0x3ab   : > { %2460 = dma.done.wait (%p2234_p0), %s1742_s13, 128  }
 0x3ac   : > { %2462 = vsyncadd (%p2234_p0), %s1742_s13, 4294967168  ;;  %p22_p4 = scmp.ge.s32.totalorder %s2581_s11, 6   ;;  %s3436_s24 = smov %s2469_s25 }
 0x3ad   : > { %s3437_s25 = smov %s2473_s26  ;;  %s3438_s26 = smov %s2593_s14 }
 0x3ae   : > { %s3439_s27 = smov %s2581_s11  ;;  %24 = sbr.rel (!%p22_p4) target bundleno = 9 (0x9), region = 112 }
 0x3b3   :  { %1748 = vsyncpa [#allocation3], 1 }
 0x3b4   :  { %1750 = vsyncpa [#allocation3 + $0x1], 1 }
 0x3b5   :  { %1751 = vsyncpa [#allocation6], 1 }
 0x3b6   :  { %1752 = vsyncpa [#allocation9], 1 }
 0x3b7   :  { %1754 = vsyncpa [#allocation9 + $0x1], 1 }
 0x3b8   :  { %1755 = vsyncpa [#allocation4], 1 }
 0x3b9   :  { %1757 = vsyncpa [#allocation4 + $0x1], 1 }

</bundles_post_ra>
